<compile_context>
chip_gen: v7x
topology: tpu7x:2x2x1
jax: 0.10.0
libtpu: 0.0.40
codegen_flags: <defaults>
</compile_context>

<pallas_src>
import functools
import math

import jax
import jax.numpy as jnp
from jax.experimental import pallas as pl
from jax.experimental.pallas import tpu as pltpu


# ----------------------------- model config (toy BERT) -----------------------------

VOCAB, TYPE_VOCAB, MAX_POS = 100, 2, 16
HIDDEN, HEADS, HEAD_DIM, FF, LAYERS = 32, 2, 16, 64, 2
CLASS_NUM = 4
LANE = 128
CLS_PAD = LANE          # classifier output padded to a lane-dense width


# ----------------------------- fused forward kernel -----------------------------

def _encoder_kernel(emb_ref, mask_ref,
                    emb_ln_g_ref, emb_ln_b_ref,
                    wqkv_ref, bqkv_ref, wo_ref, bo_ref,
                    ln1_g_ref, ln1_b_ref,
                    w1_ref, b1_ref, w2_ref, b2_ref,
                    ln2_g_ref, ln2_b_ref,
                    pool_w_ref, pool_b_ref,
                    cls_w_ref, cls_b_ref,
                    out_ref,
                    *, batch, seq, heads, head_dim, layers, scale):
    """Whole BERT-style forward on VMEM-resident tiles.

    emb:  [B*S, H] f32   mask: [B, S] f32 (additive, HF-style -10000 on padded tokens)
    stacked per-layer weights carry a leading LAYERS dim; matmul weights are bf16.
    out:  [B, CLS_PAD] f32 (only the first CLASS_NUM columns are meaningful).
    """
    H = heads * head_dim

    def ln(x, g, b):                                   # layernorm stats in f32
        mu = jnp.mean(x, axis=-1, keepdims=True)
        var = jnp.mean((x - mu) ** 2, axis=-1, keepdims=True)
        return (x - mu) * jax.lax.rsqrt(var + 1e-12) * g + b

    def mm(a, w):                                      # bf16 MXU inputs, f32 accumulate
        return jnp.dot(a.astype(w.dtype), w, preferred_element_type=jnp.float32)

    x = ln(emb_ref[...].astype(jnp.float32), emb_ln_g_ref[...], emb_ln_b_ref[...])
    mask = mask_ref[...]                               # [B, S] additive mask

    for l in range(layers):                            # static unroll, LAYERS=2
        # ---- fused QKV projection: one [H, 3H] matmul ----
        qkv = mm(x, wqkv_ref[l]) + bqkv_ref[l]         # [B*S, 3H]
        q, k, v = qkv[:, :H], qkv[:, H:2 * H], qkv[:, 2 * H:]

        # ---- multi-head self-attention, entirely in-kernel (static head loop) ----
        ctx_parts = []
        for h in range(heads):
            sl = slice(h * head_dim, (h + 1) * head_dim)
            qh = q[:, sl].reshape(batch, seq, head_dim)
            kh = k[:, sl].reshape(batch, seq, head_dim)
            vh = v[:, sl].reshape(batch, seq, head_dim)
            s = jax.lax.dot_general(                   # [B, S, S]
                qh.astype(jnp.bfloat16), kh.astype(jnp.bfloat16),
                (((2,), (2,)), ((0,), (0,))),
                preferred_element_type=jnp.float32)
            s = s * scale + mask[:, None, :]
            s = s - jnp.max(s, axis=-1, keepdims=True)
            p = jnp.exp(s)
            p = p * pl.reciprocal(jnp.sum(p, axis=-1, keepdims=True), approx=True)
            ch = jax.lax.dot_general(                  # [B, S, Dh]
                p.astype(jnp.bfloat16), vh.astype(jnp.bfloat16),
                (((2,), (1,)), ((0,), (0,))),
                preferred_element_type=jnp.float32)
            ctx_parts.append(ch.reshape(batch * seq, head_dim))
        ctx = jnp.concatenate(ctx_parts, axis=-1)      # [B*S, H]

        # ---- attention output projection + residual + LN ----
        attn_out = mm(ctx, wo_ref[l]) + bo_ref[l]
        x = ln(attn_out + x, ln1_g_ref[l], ln1_b_ref[l])

        # ---- feed-forward + residual + LN ----
        # TODO(synk): HF BERT uses exact (erf) GELU; tanh approximation used here.
        ff = jax.nn.gelu(mm(x, w1_ref[l]) + b1_ref[l], approximate=True)
        ff_out = mm(ff, w2_ref[l]) + b2_ref[l]
        x = ln(ff_out + x, ln2_g_ref[l], ln2_b_ref[l])

    # ---- pooler: tanh(dense(hidden_states[:, 0])) ----
    cls_tok = x.reshape(batch, seq, H)[:, 0, :]        # [B, H]
    pooled = jnp.tanh(mm(cls_tok, pool_w_ref[...]) + pool_b_ref[...])

    # ---- classification head (lane-padded to CLS_PAD columns) ----
    logits = mm(pooled, cls_w_ref[...]) + cls_b_ref[...]   # [B, CLS_PAD]
    out_ref[...] = logits.astype(out_ref.dtype)


def fused_forward(emb_flat, ext_mask, p, *, batch, seq):
    args = [emb_flat, ext_mask,
            p["emb_ln_g"], p["emb_ln_b"],
            p["wqkv"], p["bqkv"], p["wo"], p["bo"],
            p["ln1_g"], p["ln1_b"],
            p["w1"], p["b1"], p["w2"], p["b2"],
            p["ln2_g"], p["ln2_b"],
            p["pool_w"], p["pool_b"],
            p["cls_w_pad"], p["cls_b_pad"]]

    def full_spec(a):
        nd = a.ndim
        return pl.BlockSpec(a.shape, lambda i, _nd=nd: (0,) * _nd)

    kernel = functools.partial(
        _encoder_kernel, batch=batch, seq=seq, heads=HEADS, head_dim=HEAD_DIM,
        layers=LAYERS, scale=1.0 / math.sqrt(HEAD_DIM))

    # Everything (weights + activations) is a few hundred KB -> one grid step, all in VMEM.
    return pl.pallas_call(
        kernel,
        out_shape=jax.ShapeDtypeStruct((batch, CLS_PAD), jnp.float32),
        grid=(1,),
        in_specs=[full_spec(a) for a in args],
        out_specs=pl.BlockSpec((batch, CLS_PAD), lambda i: (0, 0)),
        compiler_params=pltpu.CompilerParams(
            dimension_semantics=("arbitrary",),
            vmem_limit_bytes=32 * 1024 * 1024),
    )(*args)


# ----------------------------- params -----------------------------

def init_params(key):
    def nrm(key, shape, scale=0.02, dtype=jnp.float32):
        return (scale * jax.random.normal(key, shape, dtype=jnp.float32)).astype(dtype)

    keys = iter(jax.random.split(key, 32))
    bf16 = jnp.bfloat16

    cls_w = nrm(next(keys), (HIDDEN, CLASS_NUM))
    cls_w_pad = jnp.zeros((HIDDEN, CLS_PAD), jnp.float32).at[:, :CLASS_NUM].set(cls_w)

    p = {
        # embedding tables (gather done host-side as glue)
        "word_emb": nrm(next(keys), (VOCAB, HIDDEN)),
        "pos_emb": nrm(next(keys), (MAX_POS, HIDDEN)),
        "type_emb": nrm(next(keys), (TYPE_VOCAB, HIDDEN)),
        "emb_ln_g": jnp.ones((1, HIDDEN), jnp.float32),
        "emb_ln_b": jnp.zeros((1, HIDDEN), jnp.float32),
        # stacked per-layer weights; matmul weights in bf16 (f32 accumulation in-kernel)
        "wqkv": nrm(next(keys), (LAYERS, HIDDEN, 3 * HIDDEN), dtype=bf16),
        "bqkv": jnp.zeros((LAYERS, 1, 3 * HIDDEN), jnp.float32),
        "wo": nrm(next(keys), (LAYERS, HIDDEN, HIDDEN), dtype=bf16),
        "bo": jnp.zeros((LAYERS, 1, HIDDEN), jnp.float32),
        "ln1_g": jnp.ones((LAYERS, 1, HIDDEN), jnp.float32),
        "ln1_b": jnp.zeros((LAYERS, 1, HIDDEN), jnp.float32),
        "w1": nrm(next(keys), (LAYERS, HIDDEN, FF), dtype=bf16),
        "b1": jnp.zeros((LAYERS, 1, FF), jnp.float32),
        "w2": nrm(next(keys), (LAYERS, FF, HIDDEN), dtype=bf16),
        "b2": jnp.zeros((LAYERS, 1, HIDDEN), jnp.float32),
        "ln2_g": jnp.ones((LAYERS, 1, HIDDEN), jnp.float32),
        "ln2_b": jnp.zeros((LAYERS, 1, HIDDEN), jnp.float32),
        # pooler + classification head (the module's own nn.Linear(hidden -> class_num))
        "pool_w": nrm(next(keys), (HIDDEN, HIDDEN), dtype=bf16),
        "pool_b": jnp.zeros((1, HIDDEN), jnp.float32),
        "cls_w_pad": cls_w_pad.astype(bf16),
        "cls_b_pad": jnp.zeros((1, CLS_PAD), jnp.float32),
    }
    return p


# ----------------------------- forward -----------------------------

def case_classification_forward(params, input_ids, attention_mask, token_type_ids):
    """Equivalent of CaseClassification.forward: logits = Linear(bert(...).pooler_output)."""
    B, S = input_ids.shape

    # embeddings: gathers are host-side glue; everything after them runs in one Pallas kernel
    emb = (params["word_emb"][input_ids]
           + params["pos_emb"][jnp.arange(S)][None, :, :]
           + params["type_emb"][token_type_ids])                        # [B, S, H]
    emb_flat = emb.reshape(B * S, HIDDEN).astype(jnp.float32)

    # HF-style extended additive attention mask: (1 - mask) * -10000
    ext_mask = (1.0 - attention_mask.astype(jnp.float32)) * -10000.0    # [B, S]

    logits_pad = fused_forward(emb_flat, ext_mask, params, batch=B, seq=S)
    return logits_pad[:, :CLASS_NUM]                                    # [B, class_num]


if __name__ == "__main__":
    key = jax.random.PRNGKey(0)
    pkey, ikey = jax.random.split(key)

    B, S = 2, 8
    params = init_params(pkey)
    input_ids = jax.random.randint(ikey, (B, S), 0, VOCAB, dtype=jnp.int32)
    attention_mask = jnp.ones((B, S), dtype=jnp.int32).at[1, 6:].set(0)   # ragged example
    token_type_ids = jnp.zeros((B, S), dtype=jnp.int32).at[:, S // 2:].set(1)

    logits = case_classification_forward(params, input_ids, attention_mask, token_type_ids)
    logits = jax.block_until_ready(logits)
    assert logits.shape == (B, CLASS_NUM) and logits.dtype == jnp.float32
    assert bool(jnp.all(jnp.isfinite(logits)))
    print("KERNEL_OK")
</pallas_src>

<mosaic_0001>
module attributes {stable_mosaic.version = 11 : i64} {
  func.func @_encoder_kernel(%arg0: i32, %arg1: memref<16x32xf32, #tpu.memory_space<vmem>>, %arg2: memref<2x8xf32, #tpu.memory_space<vmem>>, %arg3: memref<1x32xf32, #tpu.memory_space<vmem>>, %arg4: memref<1x32xf32, #tpu.memory_space<vmem>>, %arg5: memref<2x32x96xbf16, #tpu.memory_space<vmem>>, %arg6: memref<2x1x96xf32, #tpu.memory_space<vmem>>, %arg7: memref<2x32x32xbf16, #tpu.memory_space<vmem>>, %arg8: memref<2x1x32xf32, #tpu.memory_space<vmem>>, %arg9: memref<2x1x32xf32, #tpu.memory_space<vmem>>, %arg10: memref<2x1x32xf32, #tpu.memory_space<vmem>>, %arg11: memref<2x32x64xbf16, #tpu.memory_space<vmem>>, %arg12: memref<2x1x64xf32, #tpu.memory_space<vmem>>, %arg13: memref<2x64x32xbf16, #tpu.memory_space<vmem>>, %arg14: memref<2x1x32xf32, #tpu.memory_space<vmem>>, %arg15: memref<2x1x32xf32, #tpu.memory_space<vmem>>, %arg16: memref<2x1x32xf32, #tpu.memory_space<vmem>>, %arg17: memref<32x32xbf16, #tpu.memory_space<vmem>>, %arg18: memref<1x32xf32, #tpu.memory_space<vmem>>, %arg19: memref<32x128xbf16, #tpu.memory_space<vmem>>, %arg20: memref<1x128xf32, #tpu.memory_space<vmem>>, %arg21: memref<2x128xf32, #tpu.memory_space<vmem>>) attributes {dimension_semantics = [#tpu.dimension_semantics<arbitrary>], iteration_bounds = array<i64: 1>, scalar_prefetch = 0 : i64, scratch_operands = 0 : i64, tpu.core_type = #tpu.core_type<tc>, window_params = [{pipeline_mode = #tpu.pipeline_mode<synchronous>, transform_indices = @transform_0, window_bounds = array<i64: 16, 32>}, {pipeline_mode = #tpu.pipeline_mode<synchronous>, transform_indices = @transform_1, window_bounds = array<i64: 2, 8>}, {pipeline_mode = #tpu.pipeline_mode<synchronous>, transform_indices = @transform_2, window_bounds = array<i64: 1, 32>}, {pipeline_mode = #tpu.pipeline_mode<synchronous>, transform_indices = @transform_3, window_bounds = array<i64: 1, 32>}, {pipeline_mode = #tpu.pipeline_mode<synchronous>, transform_indices = @transform_4, window_bounds = array<i64: 2, 32, 96>}, {pipeline_mode = #tpu.pipeline_mode<synchronous>, transform_indices = @transform_5, window_bounds = array<i64: 2, 1, 96>}, {pipeline_mode = #tpu.pipeline_mode<synchronous>, transform_indices = @transform_6, window_bounds = array<i64: 2, 32, 32>}, {pipeline_mode = #tpu.pipeline_mode<synchronous>, transform_indices = @transform_7, window_bounds = array<i64: 2, 1, 32>}, {pipeline_mode = #tpu.pipeline_mode<synchronous>, transform_indices = @transform_8, window_bounds = array<i64: 2, 1, 32>}, {pipeline_mode = #tpu.pipeline_mode<synchronous>, transform_indices = @transform_9, window_bounds = array<i64: 2, 1, 32>}, {pipeline_mode = #tpu.pipeline_mode<synchronous>, transform_indices = @transform_10, window_bounds = array<i64: 2, 32, 64>}, {pipeline_mode = #tpu.pipeline_mode<synchronous>, transform_indices = @transform_11, window_bounds = array<i64: 2, 1, 64>}, {pipeline_mode = #tpu.pipeline_mode<synchronous>, transform_indices = @transform_12, window_bounds = array<i64: 2, 64, 32>}, {pipeline_mode = #tpu.pipeline_mode<synchronous>, transform_indices = @transform_13, window_bounds = array<i64: 2, 1, 32>}, {pipeline_mode = #tpu.pipeline_mode<synchronous>, transform_indices = @transform_14, window_bounds = array<i64: 2, 1, 32>}, {pipeline_mode = #tpu.pipeline_mode<synchronous>, transform_indices = @transform_15, window_bounds = array<i64: 2, 1, 32>}, {pipeline_mode = #tpu.pipeline_mode<synchronous>, transform_indices = @transform_16, window_bounds = array<i64: 32, 32>}, {pipeline_mode = #tpu.pipeline_mode<synchronous>, transform_indices = @transform_17, window_bounds = array<i64: 1, 32>}, {pipeline_mode = #tpu.pipeline_mode<synchronous>, transform_indices = @transform_18, window_bounds = array<i64: 32, 128>}, {pipeline_mode = #tpu.pipeline_mode<synchronous>, transform_indices = @transform_19, window_bounds = array<i64: 1, 128>}, {pipeline_mode = #tpu.pipeline_mode<synchronous>, transform_indices = @transform_20, window_bounds = array<i64: 2, 128>}]} {
    %c0 = arith.constant 0 : index
    %c0_0 = arith.constant 0 : index
    %0 = vector.load %arg1[%c0, %c0_0] : memref<16x32xf32, #tpu.memory_space<vmem>>, vector<16x32xf32>
    %c0_1 = arith.constant 0 : index
    %c0_2 = arith.constant 0 : index
    %1 = vector.load %arg3[%c0_1, %c0_2] : memref<1x32xf32, #tpu.memory_space<vmem>>, vector<1x32xf32>
    %c0_3 = arith.constant 0 : index
    %c0_4 = arith.constant 0 : index
    %2 = vector.load %arg4[%c0_3, %c0_4] : memref<1x32xf32, #tpu.memory_space<vmem>>, vector<1x32xf32>
    %cst = arith.constant dense<0.000000e+00> : vector<16xf32>
    %3 = vector.multi_reduction <add>, %0, %cst [1] : vector<16x32xf32> to vector<16xf32>
    %4 = vector.shape_cast %3 : vector<16xf32> to vector<16x1xf32>
    %cst_5 = arith.constant 3.200000e+01 : f32
    %5 = vector.broadcast %cst_5 : f32 to vector<16x1xf32>
    %6 = arith.divf %4, %5 : vector<16x1xf32>
    %7 = vector.broadcast %6 : vector<16x1xf32> to vector<16x32xf32>
    %8 = arith.subf %0, %7 : vector<16x32xf32>
    %9 = arith.mulf %8, %8 : vector<16x32xf32>
    %cst_6 = arith.constant dense<0.000000e+00> : vector<16xf32>
    %10 = vector.multi_reduction <add>, %9, %cst_6 [1] : vector<16x32xf32> to vector<16xf32>
    %11 = vector.shape_cast %10 : vector<16xf32> to vector<16x1xf32>
    %cst_7 = arith.constant 3.200000e+01 : f32
    %12 = vector.broadcast %cst_7 : f32 to vector<16x1xf32>
    %13 = arith.divf %11, %12 : vector<16x1xf32>
    %14 = vector.broadcast %6 : vector<16x1xf32> to vector<16x32xf32>
    %15 = arith.subf %0, %14 : vector<16x32xf32>
    %cst_8 = arith.constant 9.99999996E-13 : f32
    %16 = vector.broadcast %cst_8 : f32 to vector<16x1xf32>
    %17 = arith.addf %13, %16 : vector<16x1xf32>
    %18 = math.rsqrt %17 : vector<16x1xf32>
    %19 = vector.broadcast %18 : vector<16x1xf32> to vector<16x32xf32>
    %20 = arith.mulf %15, %19 : vector<16x32xf32>
    %21 = vector.broadcast %1 : vector<1x32xf32> to vector<16x32xf32>
    %22 = arith.mulf %20, %21 : vector<16x32xf32>
    %23 = vector.broadcast %2 : vector<1x32xf32> to vector<16x32xf32>
    %24 = arith.addf %22, %23 : vector<16x32xf32>
    %c0_9 = arith.constant 0 : index
    %c0_10 = arith.constant 0 : index
    %25 = vector.load %arg2[%c0_9, %c0_10] : memref<2x8xf32, #tpu.memory_space<vmem>>, vector<2x8xf32>
    %c0_11 = arith.constant 0 : index
    %c0_12 = arith.constant 0 : index
    %c0_13 = arith.constant 0 : index
    %26 = vector.load %arg5[%c0_11, %c0_12, %c0_13] : memref<2x32x96xbf16, #tpu.memory_space<vmem>>, vector<1x32x96xbf16>
    %27 = vector.shape_cast %26 : vector<1x32x96xbf16> to vector<32x96xbf16>
    %28 = arith.truncf %24 : vector<16x32xf32> to vector<16x32xbf16>
    %cst_14 = arith.constant dense<0.000000e+00> : vector<16x96xf32>
    %29 = tpu.matmul %28, %27, %cst_14 {dimension_numbers = #tpu.dot_dimension_numbers<[1], [0], [0], [1], [0, 0, 1, 1], [], []>} : vector<16x32xbf16>, vector<32x96xbf16>, vector<16x96xf32> -> vector<16x96xf32>
    %c0_15 = arith.constant 0 : index
    %c0_16 = arith.constant 0 : index
    %c0_17 = arith.constant 0 : index
    %30 = vector.load %arg6[%c0_15, %c0_16, %c0_17] : memref<2x1x96xf32, #tpu.memory_space<vmem>>, vector<1x1x96xf32>
    %31 = vector.shape_cast %30 : vector<1x1x96xf32> to vector<1x96xf32>
    %32 = vector.broadcast %31 : vector<1x96xf32> to vector<16x96xf32>
    %33 = arith.addf %29, %32 : vector<16x96xf32>
    %34 = vector.extract_strided_slice %33 {offsets = [0, 0], sizes = [16, 32], strides = [1, 1]} : vector<16x96xf32> to vector<16x32xf32>
    %35 = vector.extract_strided_slice %33 {offsets = [0, 32], sizes = [16, 32], strides = [1, 1]} : vector<16x96xf32> to vector<16x32xf32>
    %36 = vector.extract_strided_slice %33 {offsets = [0, 64], sizes = [16, 32], strides = [1, 1]} : vector<16x96xf32> to vector<16x32xf32>
    %37 = vector.extract_strided_slice %34 {offsets = [0, 0], sizes = [16, 16], strides = [1, 1]} : vector<16x32xf32> to vector<16x16xf32>
    %38 = vector.shape_cast %37 : vector<16x16xf32> to vector<2x8x16xf32>
    %39 = vector.extract_strided_slice %35 {offsets = [0, 0], sizes = [16, 16], strides = [1, 1]} : vector<16x32xf32> to vector<16x16xf32>
    %40 = vector.shape_cast %39 : vector<16x16xf32> to vector<2x8x16xf32>
    %41 = vector.extract_strided_slice %36 {offsets = [0, 0], sizes = [16, 16], strides = [1, 1]} : vector<16x32xf32> to vector<16x16xf32>
    %42 = vector.shape_cast %41 : vector<16x16xf32> to vector<2x8x16xf32>
    %43 = arith.truncf %38 : vector<2x8x16xf32> to vector<2x8x16xbf16>
    %44 = arith.truncf %40 : vector<2x8x16xf32> to vector<2x8x16xbf16>
    %cst_18 = arith.constant dense<0.000000e+00> : vector<2x8x8xf32>
    %45 = tpu.matmul %43, %44, %cst_18 {dimension_numbers = #tpu.dot_dimension_numbers<[2], [2], [1], [1], [0, 0, 0, 1, 1, 1], [0], [0]>} : vector<2x8x16xbf16>, vector<2x8x16xbf16>, vector<2x8x8xf32> -> vector<2x8x8xf32>
    %cst_19 = arith.constant 2.500000e-01 : f32
    %46 = vector.broadcast %cst_19 : f32 to vector<2x8x8xf32>
    %47 = arith.mulf %45, %46 : vector<2x8x8xf32>
    %48 = vector.shape_cast %25 : vector<2x8xf32> to vector<2x1x8xf32>
    %49 = vector.broadcast %48 : vector<2x1x8xf32> to vector<2x8x8xf32>
    %50 = arith.addf %47, %49 : vector<2x8x8xf32>
    %cst_20 = arith.constant dense<0xFF800000> : vector<2x8xf32>
    %51 = vector.multi_reduction <maximumf>, %50, %cst_20 [2] : vector<2x8x8xf32> to vector<2x8xf32>
    %52 = vector.shape_cast %51 : vector<2x8xf32> to vector<2x8x1xf32>
    %53 = vector.broadcast %52 : vector<2x8x1xf32> to vector<2x8x8xf32>
    %54 = arith.subf %50, %53 : vector<2x8x8xf32>
    %55 = math.exp %54 : vector<2x8x8xf32>
    %cst_21 = arith.constant dense<0.000000e+00> : vector<2x8xf32>
    %56 = vector.multi_reduction <add>, %55, %cst_21 [2] : vector<2x8x8xf32> to vector<2x8xf32>
    %57 = vector.shape_cast %56 : vector<2x8xf32> to vector<2x8x1xf32>
    %58 = tpu.reciprocal %57 {approx = true} : vector<2x8x1xf32> -> vector<2x8x1xf32>
    %59 = vector.broadcast %58 : vector<2x8x1xf32> to vector<2x8x8xf32>
    %60 = arith.mulf %55, %59 : vector<2x8x8xf32>
    %61 = arith.truncf %60 : vector<2x8x8xf32> to vector<2x8x8xbf16>
    %62 = arith.truncf %42 : vector<2x8x16xf32> to vector<2x8x16xbf16>
    %cst_22 = arith.constant dense<0.000000e+00> : vector<2x8x16xf32>
    %63 = tpu.matmul %61, %62, %cst_22 {dimension_numbers = #tpu.dot_dimension_numbers<[2], [1], [1], [2], [0, 0, 0, 1, 1, 2], [0], [0]>} : vector<2x8x8xbf16>, vector<2x8x16xbf16>, vector<2x8x16xf32> -> vector<2x8x16xf32>
    %64 = vector.shape_cast %63 : vector<2x8x16xf32> to vector<16x16xf32>
    %65 = vector.extract_strided_slice %34 {offsets = [0, 16], sizes = [16, 16], strides = [1, 1]} : vector<16x32xf32> to vector<16x16xf32>
    %66 = vector.shape_cast %65 : vector<16x16xf32> to vector<2x8x16xf32>
    %67 = vector.extract_strided_slice %35 {offsets = [0, 16], sizes = [16, 16], strides = [1, 1]} : vector<16x32xf32> to vector<16x16xf32>
    %68 = vector.shape_cast %67 : vector<16x16xf32> to vector<2x8x16xf32>
    %69 = vector.extract_strided_slice %36 {offsets = [0, 16], sizes = [16, 16], strides = [1, 1]} : vector<16x32xf32> to vector<16x16xf32>
    %70 = vector.shape_cast %69 : vector<16x16xf32> to vector<2x8x16xf32>
    %71 = arith.truncf %66 : vector<2x8x16xf32> to vector<2x8x16xbf16>
    %72 = arith.truncf %68 : vector<2x8x16xf32> to vector<2x8x16xbf16>
    %cst_23 = arith.constant dense<0.000000e+00> : vector<2x8x8xf32>
    %73 = tpu.matmul %71, %72, %cst_23 {dimension_numbers = #tpu.dot_dimension_numbers<[2], [2], [1], [1], [0, 0, 0, 1, 1, 1], [0], [0]>} : vector<2x8x16xbf16>, vector<2x8x16xbf16>, vector<2x8x8xf32> -> vector<2x8x8xf32>
    %cst_24 = arith.constant 2.500000e-01 : f32
    %74 = vector.broadcast %cst_24 : f32 to vector<2x8x8xf32>
    %75 = arith.mulf %73, %74 : vector<2x8x8xf32>
    %76 = vector.shape_cast %25 : vector<2x8xf32> to vector<2x1x8xf32>
    %77 = vector.broadcast %76 : vector<2x1x8xf32> to vector<2x8x8xf32>
    %78 = arith.addf %75, %77 : vector<2x8x8xf32>
    %cst_25 = arith.constant dense<0xFF800000> : vector<2x8xf32>
    %79 = vector.multi_reduction <maximumf>, %78, %cst_25 [2] : vector<2x8x8xf32> to vector<2x8xf32>
    %80 = vector.shape_cast %79 : vector<2x8xf32> to vector<2x8x1xf32>
    %81 = vector.broadcast %80 : vector<2x8x1xf32> to vector<2x8x8xf32>
    %82 = arith.subf %78, %81 : vector<2x8x8xf32>
    %83 = math.exp %82 : vector<2x8x8xf32>
    %cst_26 = arith.constant dense<0.000000e+00> : vector<2x8xf32>
    %84 = vector.multi_reduction <add>, %83, %cst_26 [2] : vector<2x8x8xf32> to vector<2x8xf32>
    %85 = vector.shape_cast %84 : vector<2x8xf32> to vector<2x8x1xf32>
    %86 = tpu.reciprocal %85 {approx = true} : vector<2x8x1xf32> -> vector<2x8x1xf32>
    %87 = vector.broadcast %86 : vector<2x8x1xf32> to vector<2x8x8xf32>
    %88 = arith.mulf %83, %87 : vector<2x8x8xf32>
    %89 = arith.truncf %88 : vector<2x8x8xf32> to vector<2x8x8xbf16>
    %90 = arith.truncf %70 : vector<2x8x16xf32> to vector<2x8x16xbf16>
    %cst_27 = arith.constant dense<0.000000e+00> : vector<2x8x16xf32>
    %91 = tpu.matmul %89, %90, %cst_27 {dimension_numbers = #tpu.dot_dimension_numbers<[2], [1], [1], [2], [0, 0, 0, 1, 1, 2], [0], [0]>} : vector<2x8x8xbf16>, vector<2x8x16xbf16>, vector<2x8x16xf32> -> vector<2x8x16xf32>
    %92 = vector.shape_cast %91 : vector<2x8x16xf32> to vector<16x16xf32>
    %93 = tpu.concatenate %64, %92 in 1 : vector<16x16xf32>, vector<16x16xf32> -> vector<16x32xf32>
    %c0_28 = arith.constant 0 : index
    %c0_29 = arith.constant 0 : index
    %c0_30 = arith.constant 0 : index
    %94 = vector.load %arg7[%c0_28, %c0_29, %c0_30] : memref<2x32x32xbf16, #tpu.memory_space<vmem>>, vector<1x32x32xbf16>
    %95 = vector.shape_cast %94 : vector<1x32x32xbf16> to vector<32x32xbf16>
    %96 = arith.truncf %93 : vector<16x32xf32> to vector<16x32xbf16>
    %cst_31 = arith.constant dense<0.000000e+00> : vector<16x32xf32>
    %97 = tpu.matmul %96, %95, %cst_31 {dimension_numbers = #tpu.dot_dimension_numbers<[1], [0], [0], [1], [0, 0, 1, 1], [], []>} : vector<16x32xbf16>, vector<32x32xbf16>, vector<16x32xf32> -> vector<16x32xf32>
    %c0_32 = arith.constant 0 : index
    %c0_33 = arith.constant 0 : index
    %c0_34 = arith.constant 0 : index
    %98 = vector.load %arg8[%c0_32, %c0_33, %c0_34] : memref<2x1x32xf32, #tpu.memory_space<vmem>>, vector<1x1x32xf32>
    %99 = vector.shape_cast %98 : vector<1x1x32xf32> to vector<1x32xf32>
    %100 = vector.broadcast %99 : vector<1x32xf32> to vector<16x32xf32>
    %101 = arith.addf %97, %100 : vector<16x32xf32>
    %102 = arith.addf %101, %24 : vector<16x32xf32>
    %c0_35 = arith.constant 0 : index
    %c0_36 = arith.constant 0 : index
    %c0_37 = arith.constant 0 : index
    %103 = vector.load %arg9[%c0_35, %c0_36, %c0_37] : memref<2x1x32xf32, #tpu.memory_space<vmem>>, vector<1x1x32xf32>
    %104 = vector.shape_cast %103 : vector<1x1x32xf32> to vector<1x32xf32>
    %c0_38 = arith.constant 0 : index
    %c0_39 = arith.constant 0 : index
    %c0_40 = arith.constant 0 : index
    %105 = vector.load %arg10[%c0_38, %c0_39, %c0_40] : memref<2x1x32xf32, #tpu.memory_space<vmem>>, vector<1x1x32xf32>
    %106 = vector.shape_cast %105 : vector<1x1x32xf32> to vector<1x32xf32>
    %cst_41 = arith.constant dense<0.000000e+00> : vector<16xf32>
    %107 = vector.multi_reduction <add>, %102, %cst_41 [1] : vector<16x32xf32> to vector<16xf32>
    %108 = vector.shape_cast %107 : vector<16xf32> to vector<16x1xf32>
    %cst_42 = arith.constant 3.200000e+01 : f32
    %109 = vector.broadcast %cst_42 : f32 to vector<16x1xf32>
    %110 = arith.divf %108, %109 : vector<16x1xf32>
    %111 = vector.broadcast %110 : vector<16x1xf32> to vector<16x32xf32>
    %112 = arith.subf %102, %111 : vector<16x32xf32>
    %113 = arith.mulf %112, %112 : vector<16x32xf32>
    %cst_43 = arith.constant dense<0.000000e+00> : vector<16xf32>
    %114 = vector.multi_reduction <add>, %113, %cst_43 [1] : vector<16x32xf32> to vector<16xf32>
    %115 = vector.shape_cast %114 : vector<16xf32> to vector<16x1xf32>
    %cst_44 = arith.constant 3.200000e+01 : f32
    %116 = vector.broadcast %cst_44 : f32 to vector<16x1xf32>
    %117 = arith.divf %115, %116 : vector<16x1xf32>
    %118 = vector.broadcast %110 : vector<16x1xf32> to vector<16x32xf32>
    %119 = arith.subf %102, %118 : vector<16x32xf32>
    %cst_45 = arith.constant 9.99999996E-13 : f32
    %120 = vector.broadcast %cst_45 : f32 to vector<16x1xf32>
    %121 = arith.addf %117, %120 : vector<16x1xf32>
    %122 = math.rsqrt %121 : vector<16x1xf32>
    %123 = vector.broadcast %122 : vector<16x1xf32> to vector<16x32xf32>
    %124 = arith.mulf %119, %123 : vector<16x32xf32>
    %125 = vector.broadcast %104 : vector<1x32xf32> to vector<16x32xf32>
    %126 = arith.mulf %124, %125 : vector<16x32xf32>
    %127 = vector.broadcast %106 : vector<1x32xf32> to vector<16x32xf32>
    %128 = arith.addf %126, %127 : vector<16x32xf32>
    %c0_46 = arith.constant 0 : index
    %c0_47 = arith.constant 0 : index
    %c0_48 = arith.constant 0 : index
    %129 = vector.load %arg11[%c0_46, %c0_47, %c0_48] : memref<2x32x64xbf16, #tpu.memory_space<vmem>>, vector<1x32x64xbf16>
    %130 = vector.shape_cast %129 : vector<1x32x64xbf16> to vector<32x64xbf16>
    %131 = arith.truncf %128 : vector<16x32xf32> to vector<16x32xbf16>
    %cst_49 = arith.constant dense<0.000000e+00> : vector<16x64xf32>
    %132 = tpu.matmul %131, %130, %cst_49 {dimension_numbers = #tpu.dot_dimension_numbers<[1], [0], [0], [1], [0, 0, 1, 1], [], []>} : vector<16x32xbf16>, vector<32x64xbf16>, vector<16x64xf32> -> vector<16x64xf32>
    %c0_50 = arith.constant 0 : index
    %c0_51 = arith.constant 0 : index
    %c0_52 = arith.constant 0 : index
    %133 = vector.load %arg12[%c0_50, %c0_51, %c0_52] : memref<2x1x64xf32, #tpu.memory_space<vmem>>, vector<1x1x64xf32>
    %134 = vector.shape_cast %133 : vector<1x1x64xf32> to vector<1x64xf32>
    %135 = vector.broadcast %134 : vector<1x64xf32> to vector<16x64xf32>
    %136 = arith.addf %132, %135 : vector<16x64xf32>
    %137 = arith.mulf %136, %136 : vector<16x64xf32>
    %138 = arith.mulf %136, %137 : vector<16x64xf32>
    %cst_53 = arith.constant 4.471500e-02 : f32
    %139 = vector.broadcast %cst_53 : f32 to vector<16x64xf32>
    %140 = arith.mulf %139, %138 : vector<16x64xf32>
    %141 = arith.addf %136, %140 : vector<16x64xf32>
    %cst_54 = arith.constant 0.797884583 : f32
    %142 = vector.broadcast %cst_54 : f32 to vector<16x64xf32>
    %143 = arith.mulf %142, %141 : vector<16x64xf32>
    %144 = math.tanh %143 : vector<16x64xf32>
    %cst_55 = arith.constant 1.000000e+00 : f32
    %145 = vector.broadcast %cst_55 : f32 to vector<16x64xf32>
    %146 = arith.addf %145, %144 : vector<16x64xf32>
    %cst_56 = arith.constant 5.000000e-01 : f32
    %147 = vector.broadcast %cst_56 : f32 to vector<16x64xf32>
    %148 = arith.mulf %147, %146 : vector<16x64xf32>
    %149 = arith.mulf %136, %148 : vector<16x64xf32>
    %c0_57 = arith.constant 0 : index
    %c0_58 = arith.constant 0 : index
    %c0_59 = arith.constant 0 : index
    %150 = vector.load %arg13[%c0_57, %c0_58, %c0_59] : memref<2x64x32xbf16, #tpu.memory_space<vmem>>, vector<1x64x32xbf16>
    %151 = vector.shape_cast %150 : vector<1x64x32xbf16> to vector<64x32xbf16>
    %152 = arith.truncf %149 : vector<16x64xf32> to vector<16x64xbf16>
    %cst_60 = arith.constant dense<0.000000e+00> : vector<16x32xf32>
    %153 = tpu.matmul %152, %151, %cst_60 {dimension_numbers = #tpu.dot_dimension_numbers<[1], [0], [0], [1], [0, 0, 1, 1], [], []>} : vector<16x64xbf16>, vector<64x32xbf16>, vector<16x32xf32> -> vector<16x32xf32>
    %c0_61 = arith.constant 0 : index
    %c0_62 = arith.constant 0 : index
    %c0_63 = arith.constant 0 : index
    %154 = vector.load %arg14[%c0_61, %c0_62, %c0_63] : memref<2x1x32xf32, #tpu.memory_space<vmem>>, vector<1x1x32xf32>
    %155 = vector.shape_cast %154 : vector<1x1x32xf32> to vector<1x32xf32>
    %156 = vector.broadcast %155 : vector<1x32xf32> to vector<16x32xf32>
    %157 = arith.addf %153, %156 : vector<16x32xf32>
    %158 = arith.addf %157, %128 : vector<16x32xf32>
    %c0_64 = arith.constant 0 : index
    %c0_65 = arith.constant 0 : index
    %c0_66 = arith.constant 0 : index
    %159 = vector.load %arg15[%c0_64, %c0_65, %c0_66] : memref<2x1x32xf32, #tpu.memory_space<vmem>>, vector<1x1x32xf32>
    %160 = vector.shape_cast %159 : vector<1x1x32xf32> to vector<1x32xf32>
    %c0_67 = arith.constant 0 : index
    %c0_68 = arith.constant 0 : index
    %c0_69 = arith.constant 0 : index
    %161 = vector.load %arg16[%c0_67, %c0_68, %c0_69] : memref<2x1x32xf32, #tpu.memory_space<vmem>>, vector<1x1x32xf32>
    %162 = vector.shape_cast %161 : vector<1x1x32xf32> to vector<1x32xf32>
    %cst_70 = arith.constant dense<0.000000e+00> : vector<16xf32>
    %163 = vector.multi_reduction <add>, %158, %cst_70 [1] : vector<16x32xf32> to vector<16xf32>
    %164 = vector.shape_cast %163 : vector<16xf32> to vector<16x1xf32>
    %cst_71 = arith.constant 3.200000e+01 : f32
    %165 = vector.broadcast %cst_71 : f32 to vector<16x1xf32>
    %166 = arith.divf %164, %165 : vector<16x1xf32>
    %167 = vector.broadcast %166 : vector<16x1xf32> to vector<16x32xf32>
    %168 = arith.subf %158, %167 : vector<16x32xf32>
    %169 = arith.mulf %168, %168 : vector<16x32xf32>
    %cst_72 = arith.constant dense<0.000000e+00> : vector<16xf32>
    %170 = vector.multi_reduction <add>, %169, %cst_72 [1] : vector<16x32xf32> to vector<16xf32>
    %171 = vector.shape_cast %170 : vector<16xf32> to vector<16x1xf32>
    %cst_73 = arith.constant 3.200000e+01 : f32
    %172 = vector.broadcast %cst_73 : f32 to vector<16x1xf32>
    %173 = arith.divf %171, %172 : vector<16x1xf32>
    %174 = vector.broadcast %166 : vector<16x1xf32> to vector<16x32xf32>
    %175 = arith.subf %158, %174 : vector<16x32xf32>
    %cst_74 = arith.constant 9.99999996E-13 : f32
    %176 = vector.broadcast %cst_74 : f32 to vector<16x1xf32>
    %177 = arith.addf %173, %176 : vector<16x1xf32>
    %178 = math.rsqrt %177 : vector<16x1xf32>
    %179 = vector.broadcast %178 : vector<16x1xf32> to vector<16x32xf32>
    %180 = arith.mulf %175, %179 : vector<16x32xf32>
    %181 = vector.broadcast %160 : vector<1x32xf32> to vector<16x32xf32>
    %182 = arith.mulf %180, %181 : vector<16x32xf32>
    %183 = vector.broadcast %162 : vector<1x32xf32> to vector<16x32xf32>
    %184 = arith.addf %182, %183 : vector<16x32xf32>
    %c1 = arith.constant 1 : index
    %c0_75 = arith.constant 0 : index
    %c0_76 = arith.constant 0 : index
    %185 = vector.load %arg5[%c1, %c0_75, %c0_76] : memref<2x32x96xbf16, #tpu.memory_space<vmem>>, vector<1x32x96xbf16>
    %186 = vector.shape_cast %185 : vector<1x32x96xbf16> to vector<32x96xbf16>
    %187 = arith.truncf %184 : vector<16x32xf32> to vector<16x32xbf16>
    %cst_77 = arith.constant dense<0.000000e+00> : vector<16x96xf32>
    %188 = tpu.matmul %187, %186, %cst_77 {dimension_numbers = #tpu.dot_dimension_numbers<[1], [0], [0], [1], [0, 0, 1, 1], [], []>} : vector<16x32xbf16>, vector<32x96xbf16>, vector<16x96xf32> -> vector<16x96xf32>
    %c1_78 = arith.constant 1 : index
    %c0_79 = arith.constant 0 : index
    %c0_80 = arith.constant 0 : index
    %189 = vector.load %arg6[%c1_78, %c0_79, %c0_80] : memref<2x1x96xf32, #tpu.memory_space<vmem>>, vector<1x1x96xf32>
    %190 = vector.shape_cast %189 : vector<1x1x96xf32> to vector<1x96xf32>
    %191 = vector.broadcast %190 : vector<1x96xf32> to vector<16x96xf32>
    %192 = arith.addf %188, %191 : vector<16x96xf32>
    %193 = vector.extract_strided_slice %192 {offsets = [0, 0], sizes = [16, 32], strides = [1, 1]} : vector<16x96xf32> to vector<16x32xf32>
    %194 = vector.extract_strided_slice %192 {offsets = [0, 32], sizes = [16, 32], strides = [1, 1]} : vector<16x96xf32> to vector<16x32xf32>
    %195 = vector.extract_strided_slice %192 {offsets = [0, 64], sizes = [16, 32], strides = [1, 1]} : vector<16x96xf32> to vector<16x32xf32>
    %196 = vector.extract_strided_slice %193 {offsets = [0, 0], sizes = [16, 16], strides = [1, 1]} : vector<16x32xf32> to vector<16x16xf32>
    %197 = vector.shape_cast %196 : vector<16x16xf32> to vector<2x8x16xf32>
    %198 = vector.extract_strided_slice %194 {offsets = [0, 0], sizes = [16, 16], strides = [1, 1]} : vector<16x32xf32> to vector<16x16xf32>
    %199 = vector.shape_cast %198 : vector<16x16xf32> to vector<2x8x16xf32>
    %200 = vector.extract_strided_slice %195 {offsets = [0, 0], sizes = [16, 16], strides = [1, 1]} : vector<16x32xf32> to vector<16x16xf32>
    %201 = vector.shape_cast %200 : vector<16x16xf32> to vector<2x8x16xf32>
    %202 = arith.truncf %197 : vector<2x8x16xf32> to vector<2x8x16xbf16>
    %203 = arith.truncf %199 : vector<2x8x16xf32> to vector<2x8x16xbf16>
    %cst_81 = arith.constant dense<0.000000e+00> : vector<2x8x8xf32>
    %204 = tpu.matmul %202, %203, %cst_81 {dimension_numbers = #tpu.dot_dimension_numbers<[2], [2], [1], [1], [0, 0, 0, 1, 1, 1], [0], [0]>} : vector<2x8x16xbf16>, vector<2x8x16xbf16>, vector<2x8x8xf32> -> vector<2x8x8xf32>
    %cst_82 = arith.constant 2.500000e-01 : f32
    %205 = vector.broadcast %cst_82 : f32 to vector<2x8x8xf32>
    %206 = arith.mulf %204, %205 : vector<2x8x8xf32>
    %207 = vector.shape_cast %25 : vector<2x8xf32> to vector<2x1x8xf32>
    %208 = vector.broadcast %207 : vector<2x1x8xf32> to vector<2x8x8xf32>
    %209 = arith.addf %206, %208 : vector<2x8x8xf32>
    %cst_83 = arith.constant dense<0xFF800000> : vector<2x8xf32>
    %210 = vector.multi_reduction <maximumf>, %209, %cst_83 [2] : vector<2x8x8xf32> to vector<2x8xf32>
    %211 = vector.shape_cast %210 : vector<2x8xf32> to vector<2x8x1xf32>
    %212 = vector.broadcast %211 : vector<2x8x1xf32> to vector<2x8x8xf32>
    %213 = arith.subf %209, %212 : vector<2x8x8xf32>
    %214 = math.exp %213 : vector<2x8x8xf32>
    %cst_84 = arith.constant dense<0.000000e+00> : vector<2x8xf32>
    %215 = vector.multi_reduction <add>, %214, %cst_84 [2] : vector<2x8x8xf32> to vector<2x8xf32>
    %216 = vector.shape_cast %215 : vector<2x8xf32> to vector<2x8x1xf32>
    %217 = tpu.reciprocal %216 {approx = true} : vector<2x8x1xf32> -> vector<2x8x1xf32>
    %218 = vector.broadcast %217 : vector<2x8x1xf32> to vector<2x8x8xf32>
    %219 = arith.mulf %214, %218 : vector<2x8x8xf32>
    %220 = arith.truncf %219 : vector<2x8x8xf32> to vector<2x8x8xbf16>
    %221 = arith.truncf %201 : vector<2x8x16xf32> to vector<2x8x16xbf16>
    %cst_85 = arith.constant dense<0.000000e+00> : vector<2x8x16xf32>
    %222 = tpu.matmul %220, %221, %cst_85 {dimension_numbers = #tpu.dot_dimension_numbers<[2], [1], [1], [2], [0, 0, 0, 1, 1, 2], [0], [0]>} : vector<2x8x8xbf16>, vector<2x8x16xbf16>, vector<2x8x16xf32> -> vector<2x8x16xf32>
    %223 = vector.shape_cast %222 : vector<2x8x16xf32> to vector<16x16xf32>
    %224 = vector.extract_strided_slice %193 {offsets = [0, 16], sizes = [16, 16], strides = [1, 1]} : vector<16x32xf32> to vector<16x16xf32>
    %225 = vector.shape_cast %224 : vector<16x16xf32> to vector<2x8x16xf32>
    %226 = vector.extract_strided_slice %194 {offsets = [0, 16], sizes = [16, 16], strides = [1, 1]} : vector<16x32xf32> to vector<16x16xf32>
    %227 = vector.shape_cast %226 : vector<16x16xf32> to vector<2x8x16xf32>
    %228 = vector.extract_strided_slice %195 {offsets = [0, 16], sizes = [16, 16], strides = [1, 1]} : vector<16x32xf32> to vector<16x16xf32>
    %229 = vector.shape_cast %228 : vector<16x16xf32> to vector<2x8x16xf32>
    %230 = arith.truncf %225 : vector<2x8x16xf32> to vector<2x8x16xbf16>
    %231 = arith.truncf %227 : vector<2x8x16xf32> to vector<2x8x16xbf16>
    %cst_86 = arith.constant dense<0.000000e+00> : vector<2x8x8xf32>
    %232 = tpu.matmul %230, %231, %cst_86 {dimension_numbers = #tpu.dot_dimension_numbers<[2], [2], [1], [1], [0, 0, 0, 1, 1, 1], [0], [0]>} : vector<2x8x16xbf16>, vector<2x8x16xbf16>, vector<2x8x8xf32> -> vector<2x8x8xf32>
    %cst_87 = arith.constant 2.500000e-01 : f32
    %233 = vector.broadcast %cst_87 : f32 to vector<2x8x8xf32>
    %234 = arith.mulf %232, %233 : vector<2x8x8xf32>
    %235 = vector.shape_cast %25 : vector<2x8xf32> to vector<2x1x8xf32>
    %236 = vector.broadcast %235 : vector<2x1x8xf32> to vector<2x8x8xf32>
    %237 = arith.addf %234, %236 : vector<2x8x8xf32>
    %cst_88 = arith.constant dense<0xFF800000> : vector<2x8xf32>
    %238 = vector.multi_reduction <maximumf>, %237, %cst_88 [2] : vector<2x8x8xf32> to vector<2x8xf32>
    %239 = vector.shape_cast %238 : vector<2x8xf32> to vector<2x8x1xf32>
    %240 = vector.broadcast %239 : vector<2x8x1xf32> to vector<2x8x8xf32>
    %241 = arith.subf %237, %240 : vector<2x8x8xf32>
    %242 = math.exp %241 : vector<2x8x8xf32>
    %cst_89 = arith.constant dense<0.000000e+00> : vector<2x8xf32>
    %243 = vector.multi_reduction <add>, %242, %cst_89 [2] : vector<2x8x8xf32> to vector<2x8xf32>
    %244 = vector.shape_cast %243 : vector<2x8xf32> to vector<2x8x1xf32>
    %245 = tpu.reciprocal %244 {approx = true} : vector<2x8x1xf32> -> vector<2x8x1xf32>
    %246 = vector.broadcast %245 : vector<2x8x1xf32> to vector<2x8x8xf32>
    %247 = arith.mulf %242, %246 : vector<2x8x8xf32>
    %248 = arith.truncf %247 : vector<2x8x8xf32> to vector<2x8x8xbf16>
    %249 = arith.truncf %229 : vector<2x8x16xf32> to vector<2x8x16xbf16>
    %cst_90 = arith.constant dense<0.000000e+00> : vector<2x8x16xf32>
    %250 = tpu.matmul %248, %249, %cst_90 {dimension_numbers = #tpu.dot_dimension_numbers<[2], [1], [1], [2], [0, 0, 0, 1, 1, 2], [0], [0]>} : vector<2x8x8xbf16>, vector<2x8x16xbf16>, vector<2x8x16xf32> -> vector<2x8x16xf32>
    %251 = vector.shape_cast %250 : vector<2x8x16xf32> to vector<16x16xf32>
    %252 = tpu.concatenate %223, %251 in 1 : vector<16x16xf32>, vector<16x16xf32> -> vector<16x32xf32>
    %c1_91 = arith.constant 1 : index
    %c0_92 = arith.constant 0 : index
    %c0_93 = arith.constant 0 : index
    %253 = vector.load %arg7[%c1_91, %c0_92, %c0_93] : memref<2x32x32xbf16, #tpu.memory_space<vmem>>, vector<1x32x32xbf16>
    %254 = vector.shape_cast %253 : vector<1x32x32xbf16> to vector<32x32xbf16>
    %255 = arith.truncf %252 : vector<16x32xf32> to vector<16x32xbf16>
    %cst_94 = arith.constant dense<0.000000e+00> : vector<16x32xf32>
    %256 = tpu.matmul %255, %254, %cst_94 {dimension_numbers = #tpu.dot_dimension_numbers<[1], [0], [0], [1], [0, 0, 1, 1], [], []>} : vector<16x32xbf16>, vector<32x32xbf16>, vector<16x32xf32> -> vector<16x32xf32>
    %c1_95 = arith.constant 1 : index
    %c0_96 = arith.constant 0 : index
    %c0_97 = arith.constant 0 : index
    %257 = vector.load %arg8[%c1_95, %c0_96, %c0_97] : memref<2x1x32xf32, #tpu.memory_space<vmem>>, vector<1x1x32xf32>
    %258 = vector.shape_cast %257 : vector<1x1x32xf32> to vector<1x32xf32>
    %259 = vector.broadcast %258 : vector<1x32xf32> to vector<16x32xf32>
    %260 = arith.addf %256, %259 : vector<16x32xf32>
    %261 = arith.addf %260, %184 : vector<16x32xf32>
    %c1_98 = arith.constant 1 : index
    %c0_99 = arith.constant 0 : index
    %c0_100 = arith.constant 0 : index
    %262 = vector.load %arg9[%c1_98, %c0_99, %c0_100] : memref<2x1x32xf32, #tpu.memory_space<vmem>>, vector<1x1x32xf32>
    %263 = vector.shape_cast %262 : vector<1x1x32xf32> to vector<1x32xf32>
    %c1_101 = arith.constant 1 : index
    %c0_102 = arith.constant 0 : index
    %c0_103 = arith.constant 0 : index
    %264 = vector.load %arg10[%c1_101, %c0_102, %c0_103] : memref<2x1x32xf32, #tpu.memory_space<vmem>>, vector<1x1x32xf32>
    %265 = vector.shape_cast %264 : vector<1x1x32xf32> to vector<1x32xf32>
    %cst_104 = arith.constant dense<0.000000e+00> : vector<16xf32>
    %266 = vector.multi_reduction <add>, %261, %cst_104 [1] : vector<16x32xf32> to vector<16xf32>
    %267 = vector.shape_cast %266 : vector<16xf32> to vector<16x1xf32>
    %cst_105 = arith.constant 3.200000e+01 : f32
    %268 = vector.broadcast %cst_105 : f32 to vector<16x1xf32>
    %269 = arith.divf %267, %268 : vector<16x1xf32>
    %270 = vector.broadcast %269 : vector<16x1xf32> to vector<16x32xf32>
    %271 = arith.subf %261, %270 : vector<16x32xf32>
    %272 = arith.mulf %271, %271 : vector<16x32xf32>
    %cst_106 = arith.constant dense<0.000000e+00> : vector<16xf32>
    %273 = vector.multi_reduction <add>, %272, %cst_106 [1] : vector<16x32xf32> to vector<16xf32>
    %274 = vector.shape_cast %273 : vector<16xf32> to vector<16x1xf32>
    %cst_107 = arith.constant 3.200000e+01 : f32
    %275 = vector.broadcast %cst_107 : f32 to vector<16x1xf32>
    %276 = arith.divf %274, %275 : vector<16x1xf32>
    %277 = vector.broadcast %269 : vector<16x1xf32> to vector<16x32xf32>
    %278 = arith.subf %261, %277 : vector<16x32xf32>
    %cst_108 = arith.constant 9.99999996E-13 : f32
    %279 = vector.broadcast %cst_108 : f32 to vector<16x1xf32>
    %280 = arith.addf %276, %279 : vector<16x1xf32>
    %281 = math.rsqrt %280 : vector<16x1xf32>
    %282 = vector.broadcast %281 : vector<16x1xf32> to vector<16x32xf32>
    %283 = arith.mulf %278, %282 : vector<16x32xf32>
    %284 = vector.broadcast %263 : vector<1x32xf32> to vector<16x32xf32>
    %285 = arith.mulf %283, %284 : vector<16x32xf32>
    %286 = vector.broadcast %265 : vector<1x32xf32> to vector<16x32xf32>
    %287 = arith.addf %285, %286 : vector<16x32xf32>
    %c1_109 = arith.constant 1 : index
    %c0_110 = arith.constant 0 : index
    %c0_111 = arith.constant 0 : index
    %288 = vector.load %arg11[%c1_109, %c0_110, %c0_111] : memref<2x32x64xbf16, #tpu.memory_space<vmem>>, vector<1x32x64xbf16>
    %289 = vector.shape_cast %288 : vector<1x32x64xbf16> to vector<32x64xbf16>
    %290 = arith.truncf %287 : vector<16x32xf32> to vector<16x32xbf16>
    %cst_112 = arith.constant dense<0.000000e+00> : vector<16x64xf32>
    %291 = tpu.matmul %290, %289, %cst_112 {dimension_numbers = #tpu.dot_dimension_numbers<[1], [0], [0], [1], [0, 0, 1, 1], [], []>} : vector<16x32xbf16>, vector<32x64xbf16>, vector<16x64xf32> -> vector<16x64xf32>
    %c1_113 = arith.constant 1 : index
    %c0_114 = arith.constant 0 : index
    %c0_115 = arith.constant 0 : index
    %292 = vector.load %arg12[%c1_113, %c0_114, %c0_115] : memref<2x1x64xf32, #tpu.memory_space<vmem>>, vector<1x1x64xf32>
    %293 = vector.shape_cast %292 : vector<1x1x64xf32> to vector<1x64xf32>
    %294 = vector.broadcast %293 : vector<1x64xf32> to vector<16x64xf32>
    %295 = arith.addf %291, %294 : vector<16x64xf32>
    %296 = arith.mulf %295, %295 : vector<16x64xf32>
    %297 = arith.mulf %295, %296 : vector<16x64xf32>
    %cst_116 = arith.constant 4.471500e-02 : f32
    %298 = vector.broadcast %cst_116 : f32 to vector<16x64xf32>
    %299 = arith.mulf %298, %297 : vector<16x64xf32>
    %300 = arith.addf %295, %299 : vector<16x64xf32>
    %cst_117 = arith.constant 0.797884583 : f32
    %301 = vector.broadcast %cst_117 : f32 to vector<16x64xf32>
    %302 = arith.mulf %301, %300 : vector<16x64xf32>
    %303 = math.tanh %302 : vector<16x64xf32>
    %cst_118 = arith.constant 1.000000e+00 : f32
    %304 = vector.broadcast %cst_118 : f32 to vector<16x64xf32>
    %305 = arith.addf %304, %303 : vector<16x64xf32>
    %cst_119 = arith.constant 5.000000e-01 : f32
    %306 = vector.broadcast %cst_119 : f32 to vector<16x64xf32>
    %307 = arith.mulf %306, %305 : vector<16x64xf32>
    %308 = arith.mulf %295, %307 : vector<16x64xf32>
    %c1_120 = arith.constant 1 : index
    %c0_121 = arith.constant 0 : index
    %c0_122 = arith.constant 0 : index
    %309 = vector.load %arg13[%c1_120, %c0_121, %c0_122] : memref<2x64x32xbf16, #tpu.memory_space<vmem>>, vector<1x64x32xbf16>
    %310 = vector.shape_cast %309 : vector<1x64x32xbf16> to vector<64x32xbf16>
    %311 = arith.truncf %308 : vector<16x64xf32> to vector<16x64xbf16>
    %cst_123 = arith.constant dense<0.000000e+00> : vector<16x32xf32>
    %312 = tpu.matmul %311, %310, %cst_123 {dimension_numbers = #tpu.dot_dimension_numbers<[1], [0], [0], [1], [0, 0, 1, 1], [], []>} : vector<16x64xbf16>, vector<64x32xbf16>, vector<16x32xf32> -> vector<16x32xf32>
    %c1_124 = arith.constant 1 : index
    %c0_125 = arith.constant 0 : index
    %c0_126 = arith.constant 0 : index
    %313 = vector.load %arg14[%c1_124, %c0_125, %c0_126] : memref<2x1x32xf32, #tpu.memory_space<vmem>>, vector<1x1x32xf32>
    %314 = vector.shape_cast %313 : vector<1x1x32xf32> to vector<1x32xf32>
    %315 = vector.broadcast %314 : vector<1x32xf32> to vector<16x32xf32>
    %316 = arith.addf %312, %315 : vector<16x32xf32>
    %317 = arith.addf %316, %287 : vector<16x32xf32>
    %c1_127 = arith.constant 1 : index
    %c0_128 = arith.constant 0 : index
    %c0_129 = arith.constant 0 : index
    %318 = vector.load %arg15[%c1_127, %c0_128, %c0_129] : memref<2x1x32xf32, #tpu.memory_space<vmem>>, vector<1x1x32xf32>
    %319 = vector.shape_cast %318 : vector<1x1x32xf32> to vector<1x32xf32>
    %c1_130 = arith.constant 1 : index
    %c0_131 = arith.constant 0 : index
    %c0_132 = arith.constant 0 : index
    %320 = vector.load %arg16[%c1_130, %c0_131, %c0_132] : memref<2x1x32xf32, #tpu.memory_space<vmem>>, vector<1x1x32xf32>
    %321 = vector.shape_cast %320 : vector<1x1x32xf32> to vector<1x32xf32>
    %cst_133 = arith.constant dense<0.000000e+00> : vector<16xf32>
    %322 = vector.multi_reduction <add>, %317, %cst_133 [1] : vector<16x32xf32> to vector<16xf32>
    %323 = vector.shape_cast %322 : vector<16xf32> to vector<16x1xf32>
    %cst_134 = arith.constant 3.200000e+01 : f32
    %324 = vector.broadcast %cst_134 : f32 to vector<16x1xf32>
    %325 = arith.divf %323, %324 : vector<16x1xf32>
    %326 = vector.broadcast %325 : vector<16x1xf32> to vector<16x32xf32>
    %327 = arith.subf %317, %326 : vector<16x32xf32>
    %328 = arith.mulf %327, %327 : vector<16x32xf32>
    %cst_135 = arith.constant dense<0.000000e+00> : vector<16xf32>
    %329 = vector.multi_reduction <add>, %328, %cst_135 [1] : vector<16x32xf32> to vector<16xf32>
    %330 = vector.shape_cast %329 : vector<16xf32> to vector<16x1xf32>
    %cst_136 = arith.constant 3.200000e+01 : f32
    %331 = vector.broadcast %cst_136 : f32 to vector<16x1xf32>
    %332 = arith.divf %330, %331 : vector<16x1xf32>
    %333 = vector.broadcast %325 : vector<16x1xf32> to vector<16x32xf32>
    %334 = arith.subf %317, %333 : vector<16x32xf32>
    %cst_137 = arith.constant 9.99999996E-13 : f32
    %335 = vector.broadcast %cst_137 : f32 to vector<16x1xf32>
    %336 = arith.addf %332, %335 : vector<16x1xf32>
    %337 = math.rsqrt %336 : vector<16x1xf32>
    %338 = vector.broadcast %337 : vector<16x1xf32> to vector<16x32xf32>
    %339 = arith.mulf %334, %338 : vector<16x32xf32>
    %340 = vector.broadcast %319 : vector<1x32xf32> to vector<16x32xf32>
    %341 = arith.mulf %339, %340 : vector<16x32xf32>
    %342 = vector.broadcast %321 : vector<1x32xf32> to vector<16x32xf32>
    %343 = arith.addf %341, %342 : vector<16x32xf32>
    %344 = vector.shape_cast %343 : vector<16x32xf32> to vector<2x8x32xf32>
    %345 = vector.extract_strided_slice %344 {offsets = [0, 0, 0], sizes = [2, 1, 32], strides = [1, 1, 1]} : vector<2x8x32xf32> to vector<2x1x32xf32>
    %346 = vector.shape_cast %345 : vector<2x1x32xf32> to vector<2x32xf32>
    %c0_138 = arith.constant 0 : index
    %c0_139 = arith.constant 0 : index
    %347 = vector.load %arg17[%c0_138, %c0_139] : memref<32x32xbf16, #tpu.memory_space<vmem>>, vector<32x32xbf16>
    %348 = arith.truncf %346 : vector<2x32xf32> to vector<2x32xbf16>
    %cst_140 = arith.constant dense<0.000000e+00> : vector<2x32xf32>
    %349 = tpu.matmul %348, %347, %cst_140 {dimension_numbers = #tpu.dot_dimension_numbers<[1], [0], [0], [1], [0, 0, 1, 1], [], []>} : vector<2x32xbf16>, vector<32x32xbf16>, vector<2x32xf32> -> vector<2x32xf32>
    %c0_141 = arith.constant 0 : index
    %c0_142 = arith.constant 0 : index
    %350 = vector.load %arg18[%c0_141, %c0_142] : memref<1x32xf32, #tpu.memory_space<vmem>>, vector<1x32xf32>
    %351 = vector.broadcast %350 : vector<1x32xf32> to vector<2x32xf32>
    %352 = arith.addf %349, %351 : vector<2x32xf32>
    %353 = math.tanh %352 : vector<2x32xf32>
    %c0_143 = arith.constant 0 : index
    %c0_144 = arith.constant 0 : index
    %354 = vector.load %arg19[%c0_143, %c0_144] : memref<32x128xbf16, #tpu.memory_space<vmem>>, vector<32x128xbf16>
    %355 = arith.truncf %353 : vector<2x32xf32> to vector<2x32xbf16>
    %cst_145 = arith.constant dense<0.000000e+00> : vector<2x128xf32>
    %356 = tpu.matmul %355, %354, %cst_145 {dimension_numbers = #tpu.dot_dimension_numbers<[1], [0], [0], [1], [0, 0, 1, 1], [], []>} : vector<2x32xbf16>, vector<32x128xbf16>, vector<2x128xf32> -> vector<2x128xf32>
    %c0_146 = arith.constant 0 : index
    %c0_147 = arith.constant 0 : index
    %357 = vector.load %arg20[%c0_146, %c0_147] : memref<1x128xf32, #tpu.memory_space<vmem>>, vector<1x128xf32>
    %358 = vector.broadcast %357 : vector<1x128xf32> to vector<2x128xf32>
    %359 = arith.addf %356, %358 : vector<2x128xf32>
    %c0_148 = arith.constant 0 : index
    %c0_149 = arith.constant 0 : index
    %360 = vector.load %arg21[%c0_148, %c0_149] : memref<2x128xf32, #tpu.memory_space<vmem>>, vector<2x128xf32>
    tpu.vector_store %arg21[%c0_148, %c0_149], %359 {strides = array<i32>} : memref<2x128xf32, #tpu.memory_space<vmem>>, vector<2x128xf32>,
    return
  }
  func.func @transform_0(%arg0: i32) -> (i32, i32) {
    %c0_i32 = arith.constant 0 : i32
    %c0_i32_0 = arith.constant 0 : i32
    %c0_i32_1 = arith.constant 0 : i32
    return %c0_i32, %c0_i32_0 : i32, i32
  }
  func.func @transform_1(%arg0: i32) -> (i32, i32) {
    %c0_i32 = arith.constant 0 : i32
    %c0_i32_0 = arith.constant 0 : i32
    %c0_i32_1 = arith.constant 0 : i32
    return %c0_i32, %c0_i32_0 : i32, i32
  }
  func.func @transform_2(%arg0: i32) -> (i32, i32) {
    %c0_i32 = arith.constant 0 : i32
    %c0_i32_0 = arith.constant 0 : i32
    %c0_i32_1 = arith.constant 0 : i32
    return %c0_i32, %c0_i32_0 : i32, i32
  }
  func.func @transform_3(%arg0: i32) -> (i32, i32) {
    %c0_i32 = arith.constant 0 : i32
    %c0_i32_0 = arith.constant 0 : i32
    %c0_i32_1 = arith.constant 0 : i32
    return %c0_i32, %c0_i32_0 : i32, i32
  }
  func.func @transform_4(%arg0: i32) -> (i32, i32, i32) {
    %c0_i32 = arith.constant 0 : i32
    %c0_i32_0 = arith.constant 0 : i32
    %c0_i32_1 = arith.constant 0 : i32
    %c0_i32_2 = arith.constant 0 : i32
    return %c0_i32, %c0_i32_0, %c0_i32_1 : i32, i32, i32
  }
  func.func @transform_5(%arg0: i32) -> (i32, i32, i32) {
    %c0_i32 = arith.constant 0 : i32
    %c0_i32_0 = arith.constant 0 : i32
    %c0_i32_1 = arith.constant 0 : i32
    %c0_i32_2 = arith.constant 0 : i32
    return %c0_i32, %c0_i32_0, %c0_i32_1 : i32, i32, i32
  }
  func.func @transform_6(%arg0: i32) -> (i32, i32, i32) {
    %c0_i32 = arith.constant 0 : i32
    %c0_i32_0 = arith.constant 0 : i32
    %c0_i32_1 = arith.constant 0 : i32
    %c0_i32_2 = arith.constant 0 : i32
    return %c0_i32, %c0_i32_0, %c0_i32_1 : i32, i32, i32
  }
  func.func @transform_7(%arg0: i32) -> (i32, i32, i32) {
    %c0_i32 = arith.constant 0 : i32
    %c0_i32_0 = arith.constant 0 : i32
    %c0_i32_1 = arith.constant 0 : i32
    %c0_i32_2 = arith.constant 0 : i32
    return %c0_i32, %c0_i32_0, %c0_i32_1 : i32, i32, i32
  }
  func.func @transform_8(%arg0: i32) -> (i32, i32, i32) {
    %c0_i32 = arith.constant 0 : i32
    %c0_i32_0 = arith.constant 0 : i32
    %c0_i32_1 = arith.constant 0 : i32
    %c0_i32_2 = arith.constant 0 : i32
    return %c0_i32, %c0_i32_0, %c0_i32_1 : i32, i32, i32
  }
  func.func @transform_9(%arg0: i32) -> (i32, i32, i32) {
    %c0_i32 = arith.constant 0 : i32
    %c0_i32_0 = arith.constant 0 : i32
    %c0_i32_1 = arith.constant 0 : i32
    %c0_i32_2 = arith.constant 0 : i32
    return %c0_i32, %c0_i32_0, %c0_i32_1 : i32, i32, i32
  }
  func.func @transform_10(%arg0: i32) -> (i32, i32, i32) {
    %c0_i32 = arith.constant 0 : i32
    %c0_i32_0 = arith.constant 0 : i32
    %c0_i32_1 = arith.constant 0 : i32
    %c0_i32_2 = arith.constant 0 : i32
    return %c0_i32, %c0_i32_0, %c0_i32_1 : i32, i32, i32
  }
  func.func @transform_11(%arg0: i32) -> (i32, i32, i32) {
    %c0_i32 = arith.constant 0 : i32
    %c0_i32_0 = arith.constant 0 : i32
    %c0_i32_1 = arith.constant 0 : i32
    %c0_i32_2 = arith.constant 0 : i32
    return %c0_i32, %c0_i32_0, %c0_i32_1 : i32, i32, i32
  }
  func.func @transform_12(%arg0: i32) -> (i32, i32, i32) {
    %c0_i32 = arith.constant 0 : i32
    %c0_i32_0 = arith.constant 0 : i32
    %c0_i32_1 = arith.constant 0 : i32
    %c0_i32_2 = arith.constant 0 : i32
    return %c0_i32, %c0_i32_0, %c0_i32_1 : i32, i32, i32
  }
  func.func @transform_13(%arg0: i32) -> (i32, i32, i32) {
    %c0_i32 = arith.constant 0 : i32
    %c0_i32_0 = arith.constant 0 : i32
    %c0_i32_1 = arith.constant 0 : i32
    %c0_i32_2 = arith.constant 0 : i32
    return %c0_i32, %c0_i32_0, %c0_i32_1 : i32, i32, i32
  }
  func.func @transform_14(%arg0: i32) -> (i32, i32, i32) {
    %c0_i32 = arith.constant 0 : i32
    %c0_i32_0 = arith.constant 0 : i32
    %c0_i32_1 = arith.constant 0 : i32
    %c0_i32_2 = arith.constant 0 : i32
    return %c0_i32, %c0_i32_0, %c0_i32_1 : i32, i32, i32
  }
  func.func @transform_15(%arg0: i32) -> (i32, i32, i32) {
    %c0_i32 = arith.constant 0 : i32
    %c0_i32_0 = arith.constant 0 : i32
    %c0_i32_1 = arith.constant 0 : i32
    %c0_i32_2 = arith.constant 0 : i32
    return %c0_i32, %c0_i32_0, %c0_i32_1 : i32, i32, i32
  }
  func.func @transform_16(%arg0: i32) -> (i32, i32) {
    %c0_i32 = arith.constant 0 : i32
    %c0_i32_0 = arith.constant 0 : i32
    %c0_i32_1 = arith.constant 0 : i32
    return %c0_i32, %c0_i32_0 : i32, i32
  }
  func.func @transform_17(%arg0: i32) -> (i32, i32) {
    %c0_i32 = arith.constant 0 : i32
    %c0_i32_0 = arith.constant 0 : i32
    %c0_i32_1 = arith.constant 0 : i32
    return %c0_i32, %c0_i32_0 : i32, i32
  }
  func.func @transform_18(%arg0: i32) -> (i32, i32) {
    %c0_i32 = arith.constant 0 : i32
    %c0_i32_0 = arith.constant 0 : i32
    %c0_i32_1 = arith.constant 0 : i32
    return %c0_i32, %c0_i32_0 : i32, i32
  }
  func.func @transform_19(%arg0: i32) -> (i32, i32) {
    %c0_i32 = arith.constant 0 : i32
    %c0_i32_0 = arith.constant 0 : i32
    %c0_i32_1 = arith.constant 0 : i32
    return %c0_i32, %c0_i32_0 : i32, i32
  }
  func.func @transform_20(%arg0: i32) -> (i32, i32) {
    %c0_i32 = arith.constant 0 : i32
    %c0_i32_0 = arith.constant 0 : i32
    %c0_i32_1 = arith.constant 0 : i32
    return %c0_i32, %c0_i32_0 : i32, i32
  }
}

</mosaic_0001>

<bundles_post_ra>
// kernel: tpu_custom_call.1
= control target key start
LH: loop header
LB: loop body
LE: loop exit
PB: predicated region body
PF: predicated region fallthrough
CT: control target
= control target key end

     0   :  { %s3678_s0 = inlined_call_operand.hbm [shape: f32[16,32], index: 0, kind: input, shape index: {}]   ;;  %s3679_s1 = inlined_call_operand.hbm [shape: f32[2,8], index: 1, kind: input, shape index: {}]   ;;  %s3680_s2 = inlined_call_operand.hbm [shape: f32[1,32], index: 2, kind: input, shape index: {}]   ;;  %s3681_s3 = inlined_call_operand.hbm [shape: f32[1,32], index: 3, kind: input, shape index: {}]   ;;  %s3682_s4 = inlined_call_operand.vmem [shape: bf16[2,32,96], index: 4, kind: input, shape index: {}]   ;;  %s3683_s5 = inlined_call_operand.hbm [shape: f32[2,1,96], index: 5, kind: input, shape index: {}]   ;;  %s3684_s6 = inlined_call_operand.vmem [shape: bf16[2,32,32], index: 6, kind: input, shape index: {}]   ;;  %s3685_s7 = inlined_call_operand.hbm [shape: f32[2,1,32], index: 7, kind: input, shape index: {}]   ;;  %s3686_s8 = inlined_call_operand.hbm [shape: f32[2,1,32], index: 8, kind: input, shape index: {}]   ;;  %s3687_s9 = inlined_call_operand.hbm [shape: f32[2,1,32], index: 9, kind: input, shape index: {}]   ;;  %s3688_s10 = inlined_call_operand.vmem [shape: bf16[2,32,64], index: 10, kind: input, shape index: {}]   ;;  %s3689_s11 = inlined_call_operand.hbm [shape: f32[2,1,64], index: 11, kind: input, shape index: {}]   ;;  %s3690_s12 = inlined_call_operand.vmem [shape: bf16[2,64,32], index: 12, kind: input, shape index: {}]   ;;  %s3691_s13 = inlined_call_operand.hbm [shape: f32[2,1,32], index: 13, kind: input, shape index: {}]   ;;  %s3692_s14 = inlined_call_operand.hbm [shape: f32[2,1,32], index: 14, kind: input, shape index: {}]   ;;  %s3693_s15 = inlined_call_operand.hbm [shape: f32[2,1,32], index: 15, kind: input, shape index: {}]   ;;  %s3694_s16 = inlined_call_operand.vmem [shape: bf16[32,32], index: 16, kind: input, shape index: {}]   ;;  %s3695_s17 = inlined_call_operand.hbm [shape: f32[1,32], index: 17, kind: input, shape index: {}]   ;;  %s3696_s18 = inlined_call_operand.vmem [shape: bf16[32,128], index: 18, kind: input, shape index: {}]   ;;  %s3697_s19 = inlined_call_operand.vmem [shape: f32[1,128], index: 19, kind: input, shape index: {}]   ;;  %s3698_s20 = inlined_call_operand.hbm [shape: f32[2,128], index: 20, kind: output, shape index: {}]  }
   0x1   :  { %3706 = sst [smem:[#allocation32_spill]] %s3678_s0 }
   0x2   :  { %3707 = sst [smem:[#allocation33_spill]] %s3679_s1 }
   0x3   :  { %3708 = sst [smem:[#allocation34_spill]] %s3680_s2 }
   0x4   :  { %3709 = sst [smem:[#allocation35_spill]] %s3681_s3 }
   0x5   :  { %3710 = sst [smem:[#allocation36_spill]] %s3682_s4 }
   0x6   :  { %25 = vsyncpa [#allocation3], 0 }
   0x7   :  { %26 = vsyncpa [#allocation6], 0 }
   0x8   :  { %27 = vsyncpa [#allocation9], 0 }
   0x9   :  { %28 = vsyncpa [#allocation12], 0 }
   0xa   :  { %29 = vsyncpa [#allocation15], 0 }
   0xb   :  { %30 = vsyncpa [#allocation18], 0 }
   0xc   :  { %31 = vsyncpa [#allocation21], 0 }
   0xd   :  { %32 = vsyncpa [#allocation4], 0  ;;  %s2998_s1 = smov [#allocation5]   ;;  %s2999_s23 = smov [#allocation8]  }
   0xe   :  { %s51_s22 = sshll.u32 %s2998_s1, 4  ;;  %s71_s24 = sshll.u32 %s2999_s23, 4  ;;  %s52_s22 = int_to_ptr.vmem [resolvable:$true] %s51_s22  ;;  %s72_s24 = int_to_ptr.vmem [resolvable:$true] %s71_s24 }
   0xf   :  { %s3711_s3 = sld [smem:[#allocation33_spill]] }
  0x15   :  { %s2674_s26 = scalar_lea.hbm %s3711_s3, 32 }
  0x16   :  { %p2675_p0 = scmp.ne.s32.totalorder %s3711_s3, %s2674_s26  ;;  %p2678_p1 = scmp.lt.u32.totalorder %s2674_s26, %s3711_s3 }
  0x18   :  { %p2680_p2 = pnand %p2678_p1, %p2675_p0 }
  0x1a   :  { %2683 = shalt.err (!%p2680_p2)
}
  0x1b   :  { %s2684_s30 = scalar_lea.vmem %s52_s22, 32  ;;  %p2689_p4 = scmp.lt.s32.totalorder %s52_s22, %s52_s22 }
  0x1c   :  { %p2685_p3 = scmp.ne.s32.totalorder %s52_s22, %s2684_s30  ;;  %p2690_p5 = scmp.lt.s32.totalorder %s2684_s30, %s2684_s30 }
  0x1e   :  { %p2691_p6 = por %p2690_p5, %p2689_p4 }
  0x20   :  { %p2692_p7 = pnand %p2691_p6, %p2685_p3 }
  0x22   :  { %2695 = shalt.err (!%p2692_p7)
}
  0x23   :  { %54 = dma.hbm_to_vmem [thread:$0]  %s3711_s3, 32, %s52_s22, [#allocation6]  }
  0x24   :  { %s3712_s2 = sld [smem:[#allocation35_spill]] }
  0x2a   :  { %s2696_s25 = scalar_lea.hbm %s3712_s2, 16 }
  0x2b   :  { %p2697_p8 = scmp.ne.s32.totalorder %s3712_s2, %s2696_s25  ;;  %p2700_p9 = scmp.lt.u32.totalorder %s2696_s25, %s3712_s2 }
  0x2d   :  { %p2702_p10 = pnand %p2700_p9, %p2697_p8 }
  0x2f   :  { %2705 = shalt.err (!%p2702_p10)
}
  0x30   :  { %s2706_s29 = scalar_lea.vmem %s72_s24, 16  ;;  %s2710_s30 = scalar_lea.vmem %s72_s24, 32 }
  0x31   :  { %p2707_p11 = scmp.ne.s32.totalorder %s72_s24, %s2706_s29  ;;  %p2711_p12 = scmp.lt.s32.totalorder %s72_s24, %s72_s24 }
  0x32   :  { %p2712_p13 = scmp.lt.s32.totalorder %s2710_s30, %s2706_s29 }
  0x34   :  { %p2713_p0 = por %p2712_p13, %p2711_p12 }
  0x36   :  { %p2714_p1 = pnand %p2713_p0, %p2707_p11 }
  0x38   :  { %2717 = shalt.err (!%p2714_p1)
}
  0x39   :  { %74 = dma.hbm_to_vmem [thread:$0]  %s3712_s2, 16, %s72_s24, [#allocation9]  }
  0x3a   :  { %s3000_s0 = smov [#allocation11]   ;;  %s3001_s1 = smov [#allocation14]  }
  0x3b   :  { %s96_s21 = sshll.u32 %s3000_s0, 4  ;;  %s120_s23 = sshll.u32 %s3001_s1, 4  ;;  %s97_s21 = int_to_ptr.vmem [resolvable:$true] %s96_s21  ;;  %s3153_s23 = int_to_ptr.vmem [resolvable:$true] %s120_s23 }
  0x3c   :  { %s2718_s28 = scalar_lea.hbm %s3685_s7, 32 }
  0x3d   :  { %p2719_p2 = scmp.ne.s32.totalorder %s3685_s7, %s2718_s28  ;;  %p2722_p3 = scmp.lt.u32.totalorder %s2718_s28, %s3685_s7 }
  0x3f   :  { %p2724_p4 = pnand %p2722_p3, %p2719_p2 }
  0x41   :  { %2727 = shalt.err (!%p2724_p4)
}
  0x42   :  { %s2728_s24 = scalar_lea.vmem %s97_s21, 32  ;;  %p2733_p6 = scmp.lt.s32.totalorder %s97_s21, %s97_s21 }
  0x43   :  { %p2729_p5 = scmp.ne.s32.totalorder %s97_s21, %s2728_s24  ;;  %p2734_p7 = scmp.lt.s32.totalorder %s2728_s24, %s2728_s24 }
  0x45   :  { %p2735_p8 = por %p2734_p7, %p2733_p6 }
  0x47   :  { %p2736_p9 = pnand %p2735_p8, %p2729_p5 }
  0x49   :  { %2739 = shalt.err (!%p2736_p9)
}
  0x4a   :  { %s3704_s2 = smov 16   ;;  %s3003_s22 = smov 1  }
  0x4b   :  { %102 = dma.hbm_to_vmem [thread:$0]  %s3685_s7, 32, %s97_s21, [#allocation12], %s3704_s2, %s3704_s2, %s3003_s22  }
  0x4c   :  { %s2740_s27 = scalar_lea.hbm %s3687_s9, 32 }
  0x4d   :  { %p2741_p10 = scmp.ne.s32.totalorder %s3687_s9, %s2740_s27  ;;  %p2744_p11 = scmp.lt.u32.totalorder %s2740_s27, %s3687_s9 }
  0x4f   :  { %p2746_p12 = pnand %p2744_p11, %p2741_p10 }
  0x51   :  { %2749 = shalt.err (!%p2746_p12)
}
  0x52   :  { %s2750_s30 = scalar_lea.vmem %s3153_s23, 32  ;;  %p2755_p0 = scmp.lt.s32.totalorder %s3153_s23, %s3153_s23 }
  0x53   :  { %p2751_p13 = scmp.ne.s32.totalorder %s3153_s23, %s2750_s30  ;;  %p2756_p1 = scmp.lt.s32.totalorder %s2750_s30, %s2750_s30 }
  0x55   :  { %p2757_p2 = por %p2756_p1, %p2755_p0 }
  0x57   :  { %p2758_p3 = pnand %p2757_p2, %p2751_p13 }
  0x59   :  { %2761 = shalt.err (!%p2758_p3)
}
  0x5a   :  { %126 = dma.hbm_to_vmem [thread:$0]  %s3687_s9, 32, %s3153_s23, [#allocation15], %s3704_s2, %s3704_s2, %s3003_s22  }
  0x5b   :  { %s3004_s24 = smov [#allocation17]   ;;  %s3005_s0 = smov [#allocation20]  }
  0x5c   :  { %s148_s3 = sshll.u32 %s3004_s24, 4  ;;  %s172_s1 = sshll.u32 %s3005_s0, 4  ;;  %s149_s3 = int_to_ptr.vmem [resolvable:$true] %s148_s3  ;;  %s3190_s1 = int_to_ptr.vmem [resolvable:$true] %s172_s1 }
  0x5d   :  { %s2762_s28 = scalar_lea.hbm %s3691_s13, 32 }
  0x5e   :  { %p2763_p4 = scmp.ne.s32.totalorder %s3691_s13, %s2762_s28  ;;  %p2766_p5 = scmp.lt.u32.totalorder %s2762_s28, %s3691_s13 }
  0x60   :  { %p2768_p6 = pnand %p2766_p5, %p2763_p4 }
  0x62   :  { %2771 = shalt.err (!%p2768_p6)
}
  0x63   :  { %s2772_s9 = scalar_lea.vmem %s149_s3, 32  ;;  %p2777_p8 = scmp.lt.s32.totalorder %s149_s3, %s149_s3 }
  0x64   :  { %p2773_p7 = scmp.ne.s32.totalorder %s149_s3, %s2772_s9  ;;  %p2778_p9 = scmp.lt.s32.totalorder %s2772_s9, %s2772_s9 }
  0x66   :  { %p2779_p10 = por %p2778_p9, %p2777_p8 }
  0x68   :  { %p2780_p11 = pnand %p2779_p10, %p2773_p7 }
  0x6a   :  { %2783 = shalt.err (!%p2780_p11)
}
  0x6b   :  { %154 = dma.hbm_to_vmem [thread:$0]  %s3691_s13, 32, %s149_s3, [#allocation18], %s3704_s2, %s3704_s2, %s3003_s22  }
  0x6c   :  { %s2784_s0 = scalar_lea.hbm %s3693_s15, 32 }
  0x6d   :  { %p2785_p12 = scmp.ne.s32.totalorder %s3693_s15, %s2784_s0  ;;  %p2788_p13 = scmp.lt.u32.totalorder %s2784_s0, %s3693_s15 }
  0x6f   :  { %p2790_p0 = pnand %p2788_p13, %p2785_p12 }
  0x71   :  { %2793 = shalt.err (!%p2790_p0)
}
  0x72   :  { %s2794_s4 = scalar_lea.vmem %s3190_s1, 32  ;;  %p2799_p2 = scmp.lt.s32.totalorder %s3190_s1, %s3190_s1 }
  0x73   :  { %p2795_p1 = scmp.ne.s32.totalorder %s3190_s1, %s2794_s4  ;;  %p2800_p3 = scmp.lt.s32.totalorder %s2794_s4, %s2794_s4 }
  0x75   :  { %p2801_p4 = por %p2800_p3, %p2799_p2 }
  0x77   :  { %p2802_p5 = pnand %p2801_p4, %p2795_p1 }
  0x79   :  { %2805 = shalt.err (!%p2802_p5)
}
  0x7a   :  { %178 = dma.hbm_to_vmem [thread:$0]  %s3693_s15, 32, %s3190_s1, [#allocation21], %s3704_s2, %s3704_s2, %s3003_s22  }
  0x7b   :  { %s3006_s29 = smov [#allocation2]   ;;  %s3713_s7 = sld [smem:[#allocation32_spill]] }
  0x7c   :  { %s38_s30 = sshll.u32 %s3006_s29, 4  ;;  %s39_s30 = int_to_ptr.vmem [resolvable:$true] %s38_s30 }
  0x81   :  { %s2806_s21 = scalar_lea.hbm %s3713_s7, 256 }
  0x82   :  { %p2807_p6 = scmp.ne.s32.totalorder %s3713_s7, %s2806_s21  ;;  %p2810_p7 = scmp.lt.u32.totalorder %s2806_s21, %s3713_s7 }
  0x84   :  { %p2812_p8 = pnand %p2810_p7, %p2807_p6 }
  0x86   :  { %2815 = shalt.err (!%p2812_p8)
}
  0x87   :  { %s2816_s28 = scalar_lea.vmem %s39_s30, 256  ;;  %p2821_p10 = scmp.lt.s32.totalorder %s39_s30, %s39_s30 }
  0x88   :  { %p2817_p9 = scmp.ne.s32.totalorder %s39_s30, %s2816_s28  ;;  %p2822_p11 = scmp.lt.s32.totalorder %s2816_s28, %s2816_s28 }
  0x8a   :  { %p2823_p12 = por %p2822_p11, %p2821_p10 }
  0x8c   :  { %p2824_p13 = pnand %p2823_p12, %p2817_p9 }
  0x8e   :  { %2827 = shalt.err (!%p2824_p13)
}
  0x8f   :  { %s3007_s15 = smov 128   ;;  %s3008_s1 = smov 8  }
  0x90   :  { %44 = dma.hbm_to_vmem [thread:$0]  %s3713_s7, 256, %s39_s30, [#allocation3], %s3007_s15, %s3007_s15, %s3008_s1  }
  0x91   :  { %s3009_s13 = smov [#allocation7]   ;;  %s3010_s29 = smov [#allocation10]  }
  0x92   :  { %s61_s3 = sshll.u32 %s3009_s13, 4  ;;  %s82_s9 = sshll.u32 %s3010_s29, 4  ;;  %s62_s3 = int_to_ptr.vmem [resolvable:$true] %s61_s3  ;;  %s83_s9 = int_to_ptr.vmem [resolvable:$true] %s82_s9 }
  0x93   :  { %s3714_s24 = sld [smem:[#allocation34_spill]] }
  0x99   :  { %s2828_s0 = scalar_lea.hbm %s3714_s24, 16 }
  0x9a   :  { %p2829_p0 = scmp.ne.s32.totalorder %s3714_s24, %s2828_s0  ;;  %p2832_p1 = scmp.lt.u32.totalorder %s2828_s0, %s3714_s24 }
  0x9c   :  { %p2834_p2 = pnand %p2832_p1, %p2829_p0 }
  0x9e   :  { %2837 = shalt.err (!%p2834_p2)
}
  0x9f   :  { %s2838_s30 = scalar_lea.vmem %s62_s3, 16  ;;  %s2842_s7 = scalar_lea.vmem %s62_s3, 32 }
  0xa0   :  { %p2839_p3 = scmp.ne.s32.totalorder %s62_s3, %s2838_s30  ;;  %p2843_p4 = scmp.lt.s32.totalorder %s62_s3, %s62_s3 }
  0xa1   :  { %p2844_p5 = scmp.lt.s32.totalorder %s2842_s7, %s2838_s30 }
  0xa3   :  { %p2845_p6 = por %p2844_p5, %p2843_p4 }
  0xa5   :  { %p2846_p7 = pnand %p2845_p6, %p2839_p3 }
  0xa7   :  { %2849 = shalt.err (!%p2846_p7)
}
  0xa8   :  { %64 = dma.hbm_to_vmem [thread:$0]  %s3714_s24, 16, %s62_s3, [#allocation6]  }
  0xa9   :  { %s2850_s2 = scalar_lea.hbm %s3683_s5, 32 }
  0xaa   :  { %p2851_p8 = scmp.ne.s32.totalorder %s3683_s5, %s2850_s2  ;;  %p2854_p9 = scmp.lt.u32.totalorder %s2850_s2, %s3683_s5 }
  0xac   :  { %p2856_p10 = pnand %p2854_p9, %p2851_p8 }
  0xae   :  { %2859 = shalt.err (!%p2856_p10)
}
  0xaf   :  { %s2860_s0 = scalar_lea.vmem %s83_s9, 32  ;;  %p2865_p12 = scmp.lt.s32.totalorder %s83_s9, %s83_s9 }
  0xb0   :  { %p2861_p11 = scmp.ne.s32.totalorder %s83_s9, %s2860_s0  ;;  %p2866_p13 = scmp.lt.s32.totalorder %s2860_s0, %s2860_s0 }
  0xb2   :  { %p2867_p0 = por %p2866_p13, %p2865_p12 }
  0xb4   :  { %p2868_p1 = pnand %p2867_p0, %p2861_p11 }
  0xb6   :  { %2871 = shalt.err (!%p2868_p1)
}
  0xb7   :  { %s3715_s3 = smov 16   ;;  %s3011_s27 = smov [#allocation13]  }
  0xb8   :  { %88 = dma.hbm_to_vmem [thread:$0]  %s3683_s5, 32, %s83_s9, [#allocation9], %s3715_s3, %s3715_s3, %s3003_s22  }
  0xb9   :  { %s108_s28 = sshll.u32 %s3011_s27, 4  ;;  %s3012_s30 = smov [#allocation16]   ;;  %s109_s28 = int_to_ptr.vmem [resolvable:$true] %s108_s28 }
  0xba   :  { %s134_s7 = sshll.u32 %s3012_s30, 4  ;;  %s2872_s26 = scalar_lea.hbm %s3686_s8, 32  ;;  %s135_s7 = int_to_ptr.vmem [resolvable:$true] %s134_s7 }
  0xbb   :  { %p2873_p2 = scmp.ne.s32.totalorder %s3686_s8, %s2872_s26  ;;  %p2876_p3 = scmp.lt.u32.totalorder %s2872_s26, %s3686_s8 }
  0xbd   :  { %p2878_p4 = pnand %p2876_p3, %p2873_p2 }
  0xbf   :  { %2881 = shalt.err (!%p2878_p4)
}
  0xc0   :  { %s2882_s5 = scalar_lea.vmem %s109_s28, 32  ;;  %p2887_p6 = scmp.lt.s32.totalorder %s109_s28, %s109_s28 }
  0xc1   :  { %p2883_p5 = scmp.ne.s32.totalorder %s109_s28, %s2882_s5  ;;  %p2888_p7 = scmp.lt.s32.totalorder %s2882_s5, %s2882_s5 }
  0xc3   :  { %p2889_p8 = por %p2888_p7, %p2887_p6 }
  0xc5   :  { %p2890_p9 = pnand %p2889_p8, %p2883_p5 }
  0xc7   :  { %2893 = shalt.err (!%p2890_p9)
}
  0xc8   :  { %114 = dma.hbm_to_vmem [thread:$0]  %s3686_s8, 32, %s109_s28, [#allocation12], %s3715_s3, %s3715_s3, %s3003_s22  }
  0xc9   :  { %s2894_s24 = scalar_lea.hbm %s3689_s11, 32 }
  0xca   :  { %p2895_p10 = scmp.ne.s32.totalorder %s3689_s11, %s2894_s24  ;;  %p2898_p11 = scmp.lt.u32.totalorder %s2894_s24, %s3689_s11 }
  0xcc   :  { %p2900_p12 = pnand %p2898_p11, %p2895_p10 }
  0xce   :  { %2903 = shalt.err (!%p2900_p12)
}
  0xcf   :  { %s2904_s1 = scalar_lea.vmem %s135_s7, 32  ;;  %p2909_p0 = scmp.lt.s32.totalorder %s135_s7, %s135_s7 }
  0xd0   :  { %p2905_p13 = scmp.ne.s32.totalorder %s135_s7, %s2904_s1  ;;  %p2910_p1 = scmp.lt.s32.totalorder %s2904_s1, %s2904_s1 }
  0xd2   :  { %p2911_p2 = por %p2910_p1, %p2909_p0 }
  0xd4   :  { %p2912_p3 = pnand %p2911_p2, %p2905_p13 }
  0xd6   :  { %2915 = shalt.err (!%p2912_p3)
}
  0xd7   :  { %140 = dma.hbm_to_vmem [thread:$0]  %s3689_s11, 32, %s135_s7, [#allocation15], %s3715_s3, %s3715_s3, %s3003_s22  }
  0xd8   :  { %s3013_s26 = smov [#allocation19]   ;;  %s3014_s2 = smov [#allocation22]  }
  0xd9   :  { %s160_s4 = sshll.u32 %s3013_s26, 4  ;;  %s187_s13 = sshll.u32 %s3014_s2, 4  ;;  %s161_s4 = int_to_ptr.vmem [resolvable:$true] %s160_s4  ;;  %s188_s13 = int_to_ptr.vmem [resolvable:$true] %s187_s13 }
  0xda   :  { %s2916_s9 = scalar_lea.hbm %s3692_s14, 32 }
  0xdb   :  { %p2917_p4 = scmp.ne.s32.totalorder %s3692_s14, %s2916_s9  ;;  %p2920_p5 = scmp.lt.u32.totalorder %s2916_s9, %s3692_s14 }
  0xdd   :  { %p2922_p6 = pnand %p2920_p5, %p2917_p4 }
  0xdf   :  { %2925 = shalt.err (!%p2922_p6)
}
  0xe0   :  { %s2926_s11 = scalar_lea.vmem %s161_s4, 32  ;;  %p2931_p8 = scmp.lt.s32.totalorder %s161_s4, %s161_s4 }
  0xe1   :  { %p2927_p7 = scmp.ne.s32.totalorder %s161_s4, %s2926_s11  ;;  %p2932_p9 = scmp.lt.s32.totalorder %s2926_s11, %s2926_s11 }
  0xe3   :  { %p2933_p10 = por %p2932_p9, %p2931_p8 }
  0xe5   :  { %p2934_p11 = pnand %p2933_p10, %p2927_p7 }
  0xe7   :  { %2937 = shalt.err (!%p2934_p11)
}
  0xe8   :  { %166 = dma.hbm_to_vmem [thread:$0]  %s3692_s14, 32, %s161_s4, [#allocation18], %s3715_s3, %s3715_s3, %s3003_s22  }
  0xe9   :  { %s2938_s15 = scalar_lea.hbm %s3695_s17, 16 }
  0xea   :  { %p2939_p12 = scmp.ne.s32.totalorder %s3695_s17, %s2938_s15  ;;  %p2942_p13 = scmp.lt.u32.totalorder %s2938_s15, %s3695_s17 }
  0xec   :  { %p2944_p0 = pnand %p2942_p13, %p2939_p12 }
  0xee   :  { %2947 = shalt.err (!%p2944_p0)
}
  0xef   :  { %s2948_s2 = scalar_lea.vmem %s188_s13, 16  ;;  %s2952_s29 = scalar_lea.vmem %s188_s13, 32 }
  0xf0   :  { %p2949_p1 = scmp.ne.s32.totalorder %s188_s13, %s2948_s2  ;;  %p2953_p2 = scmp.lt.s32.totalorder %s188_s13, %s188_s13 }
  0xf1   :  { %p2954_p3 = scmp.lt.s32.totalorder %s2952_s29, %s2948_s2 }
  0xf3   :  { %p2955_p4 = por %p2954_p3, %p2953_p2 }
  0xf5   :  { %p2956_p5 = pnand %p2955_p4, %p2949_p1 }
  0xf7   :  { %2959 = shalt.err (!%p2956_p5)
}
  0xf8   :  { %190 = dma.hbm_to_vmem [thread:$0]  %s3695_s17, 16, %s188_s13, [#allocation21]  }
  0xf9   :  { %2982 = dma.done.wait [#allocation3], 256  }
  0xfa   :  { %2983 = vsyncadd [#allocation3], 4294967040 }
  0xfb   :  { %2984 = dma.done.wait [#allocation6], 48  }
  0xfc   :  { %2985 = vsyncadd [#allocation6], 4294967248 }
  0xfd   :  { %2986 = dma.done.wait [#allocation9], 48  }
  0xfe   :  { %2987 = vsyncadd [#allocation9], 4294967248 }
  0xff   :  { %2988 = dma.done.wait [#allocation12], 64  }
 0x100   :  { %2989 = vsyncadd [#allocation12], 4294967232 }
 0x101   :  { %2990 = dma.done.wait [#allocation15], 64  }
 0x102   :  { %2991 = vsyncadd [#allocation15], 4294967232 }
 0x103   :  { %2992 = dma.done.wait [#allocation18], 64  }
 0x104   :  { %2993 = vsyncadd [#allocation18], 4294967232 }
 0x105   :  { %2994 = dma.done.wait [#allocation21], 48  }
 0x106   :  { %2995 = vsyncadd [#allocation21], 4294967248  ;;  %vm239_vm0 = vcmask 261120   ;;  %v235_v0 = vld [vmem:[#allocation2] sm:$0xff]  ;;  %v236_v1 = vld [vmem:[#allocation2 + $0x8] sm:$0xff]  ;;  %s3716_s13 = sld [smem:[#allocation36_spill]]  ;;  %v467_v49 = vlaneseq }
 0x107   :  { %v240_v2 = vsel %vm239_vm0, %v235_v0, 0.0  ;;  %v243_v3 = vsel %vm239_vm0, %v236_v1, 0.0  ;;  %v3015_v15 = vmov 0.0   ;;  %vm3016_vm1 = vmmov 0   ;;  %v2211_v25 = vld [vmem:[#allocation7] ss:$0 sm:$0xff] }
 0x108   :  { %241 = vadd.xlane.f32.xlu0 %v240_v2  ;;  %2368 = vmatprep.subr.bf16.mxu0 %v3015_v15  ;;  %v2212_v29 = vld [vmem:[#allocation8] ss:$0 sm:$0xff]  ;;  %v2213_v34 = vld [vmem:[#allocation10] ss:$0 sm:$0xff]  ;;  %s3017_s23 = smov 96   ;;  %vm357_vm2 = vcmask 130048  }
 0x109   :  { %2376 = vmatprep.subr.bf16.mxu1 %v3015_v15  ;;  %2372 = vmatprep.mubr.msk.bf16.mxu0 %vm3016_vm1, %v3015_v15  ;;  %v3018_v47 = vmov 1966171168   ;;  %v468_v51 = vshrl.u32 %v467_v49, 7  ;;  %vm490_vm3 = vcmask 64512   ;;  %s3019_s21 = smov 64   ;;  %s3020_s0 = smov 80  }
 0x10a   :  { %2378 = vmatprep.mubr.msk.bf16.mxu1 %vm3016_vm1, %v3015_v15  ;;  %v465_v48 = vunpack.c.l.s4 %v3018_v47  ;;  %v2219_v52 = vld.sshfl [vmem:[#allocation5] sm:$0x11 pattern:$0x75316420]  ;;  %vm520_vm4 = vcmask 1043456   ;;  %s3021_s24 = smov 112  }
 0x10b   :  { %v463_v54 = vcombine.high %v2219_v52, %v2219_v52  ;;  %v480_v56 = vsub.s32 0, %v468_v51  ;;  %s3022_s11 = smov 48   ;;  %vm1086_vm5 = vcmask 523264   ;;  %vm2063_vm6 = vcmask 1041409   ;;  %s3023_s25 = smov [#allocation23]  }
 0x10c   :  { %244 = vadd.xlane.f32.xlu0 %v243_v3  ;;  %v2588_v14 = vld [vmem:[%s3716_s13] sm:$0xff]   ;;  %v2589_v16 = vld [vmem:[%s3716_s13 + $0x8] sm:$0xff]   ;;  %v466_v50 = vunpack.c.0.s8 %v465_v48  ;;  %s2196_s27 = sshll.u32 %s3023_s25, 4  ;;  %s2197_s27 = int_to_ptr.vmem [resolvable:$true] %s2196_s27 }
 0x10d   :  { %2369 = vmatpush3.bf16.msra.mxu0 %v2588_v14  ;;  %p2965_p7 = scmp.lt.s32.totalorder %s2197_s27, %s2197_s27 }
 0x10e   :  { %2370 = vmatprep.subr.bf16.mxu0 %v3015_v15  ;;  %v469_v53 = vsub.s32 %v466_v50, %v468_v51 }
 0x110   :  { %v470_v55 = vrot.slane %v2219_v52, %v469_v53  ;;  %v477_v57 = vrot.slane %v463_v54, %v469_v53 }
 0x111   :  { %2371 = vmatpush3.bf16.msra.mxu0 %v2589_v16 }
 0x112   :  { %2382 = vmatprep.subr.bf16.mxu0 %v3015_v15  ;;  %v3370_v58 = vrot.slane %v470_v55, %v480_v56  ;;  %v3372_v62 = vrot.slane %v477_v57, %v480_v56 }
 0x195   :  { %v242_v4 = vpop.xlane.xlu0 %241 }
 0x196   :  { %v247_v5 = vmul.f32 0.03125, %v242_v4 }
 0x198   :  { %v249_v6 = vsub.f32 %v235_v0, %v247_v5 }
 0x199   :  { %v245_v7 = vpop.xlane.xlu0 %244 }
 0x19a   :  { %v248_v8 = vmul.f32 0.03125, %v245_v7  ;;  %v251_v9 = vmul.f32 %v249_v6, %v249_v6 }
 0x19c   :  { %v250_v10 = vsub.f32 %v236_v1, %v248_v8  ;;  %v253_v11 = vsel %vm239_vm0, %v251_v9, 0.0 }
 0x19d   :  { %254 = vadd.xlane.f32.xlu1 %v253_v11 }
 0x19e   :  { %v252_v12 = vmul.f32 %v250_v10, %v250_v10 }
 0x1a0   :  { %v256_v13 = vsel %vm239_vm0, %v252_v12, 0.0 }
 0x1a1   :  { %257 = vadd.xlane.f32.xlu1 %v256_v13 }
 0x22a   :  { %v255_v17 = vpop.xlane.xlu1 %254 }
 0x22b   :  { %v259_v18 = vmul.f32 0.03125, %v255_v17 }
 0x22d   :  { %v261_v19 = vadd.f32 1e-12, %v259_v18 }
 0x22e   :  { %v258_v20 = vpop.xlane.xlu1 %257 }
 0x22f   :  { %2612 = vrsqrt.f32 %v261_v19  ;;  %v260_v21 = vmul.f32 0.03125, %v258_v20 }
 0x231   :  { %v262_v22 = vadd.f32 1e-12, %v260_v21 }
 0x233   :  { %2614 = vrsqrt.f32 %v262_v22 }
 0x239   :  { %v2613_v23 = vpop.eup %2612 }
 0x23a   :  { %v265_v24 = vmul.f32 %v2613_v23, %v249_v6 }
 0x23c   :  { %v273_v28 = vmul.f32 %v2211_v25, %v265_v24 }
 0x23d   :  { %v2615_v26 = vpop.eup %2614 }
 0x23e   :  { %v266_v27 = vmul.f32 %v2615_v26, %v250_v10  ;;  %v3341_v31 = vadd.f32 %v2212_v29, %v273_v28 }
 0x240   :  { %v274_v30 = vmul.f32 %v2211_v25, %v266_v27 }
 0x242   :  { %v3343_v32 = vadd.f32 %v2212_v29, %v274_v30 }
 0x244   :  { %v288_v33 = vpack.c.bf16 %v3343_v32, %v3341_v31 }
 0x246   :  { %2373 = vmatmul.mubr.msk.bf16.vlgmr.msra.gmra.mrb[0].mxu0 %vm239_vm0, %v288_v33 }
 0x247   :  { %2384 = vmatprep.mubr.msk.bf16.mxu0 %vm3016_vm1, %v3015_v15 }
 0x319   :  { %v345_v35 = vpop.f32.mrb[0].mxu0 }
 0x31a   :  { %v346_v36 = vadd.f32 %v2213_v34, %v345_v35  ;;  %v2374_v37 = vpop.f32.mrb[1].mxu0 }
 0x31b   :  { %v348_v38 = vpop.f32.mrb[2].mxu0 }
 0x31c   :  { %v3350_v39 = vpack.c.bf16 %v346_v36, %v346_v36  ;;  %v349_v40 = vadd.f32 %v2213_v34, %v348_v38  ;;  %v2375_v41 = vpop.f32.mrb[3].mxu0 }
 0x31e   :  { %v3352_v42 = vpack.c.bf16 %v349_v40, %v349_v40  ;;  %355 = vrot.lane.b32.xlu0 %v3350_v39, %s3017_s23 }
 0x320   :  { %405 = vrot.lane.b32.xlu1 %v3352_v42, %s3017_s23 }
 0x390   :  { %v356_v43 = vpop.permute.xlu0 %355 }
 0x391   :  { %v362_v44 = vsel %vm357_vm2, %v356_v43, 0 }
 0x392   :  { %2377 = vmatpush3.bf16.xpose.msra.mxu1 %v362_v44  ;;  %v406_v45 = vpop.permute.xlu1 %405 }
 0x393   :  { %v411_v46 = vsel %vm357_vm2, %v406_v45, 0  ;;  %2388 = vmatprep.subr.bf16.mxu1 %v3015_v15 }
 0x394   :  { %2383 = vmatpush3.bf16.xpose.msra.mxu0 %v411_v46 }
 0x395   :  { %2394 = vmatprep.subr.bf16.mxu0 %v3015_v15 }
 0x399   :  { %2379 = vmatmul.mubr.msk.bf16.vlgmr.msra.gmra.mrb[0].mxu1 %vm357_vm2, %v3350_v39 }
 0x39a   :  { %2390 = vmatprep.mubr.msk.bf16.mxu1 %vm3016_vm1, %v3015_v15 }
 0x39b   :  { %2385 = vmatmul.mubr.msk.bf16.vlgmr.msra.gmra.mrb[4].mxu0 %vm357_vm2, %v3352_v42 }
 0x39c   :  { %2396 = vmatprep.mubr.msk.bf16.mxu0 %vm3016_vm1, %v3015_v15 }
 0x46c   :  { %v398_v59 = vpop.f32.mrb[0].mxu1 }
 0x46d   :  { %v453_v60 = vmul.f32 0.25, %v398_v59  ;;  %v2380_v61 = vpop.f32.mrb[1].mxu1 }
 0x46e   :  { %v401_v63 = vpop.f32.mrb[2].mxu1  ;;  %v447_v0 = vpop.f32.mrb[4].mxu0 }
 0x46f   :  { %v454_v1 = vmul.f32 0.25, %v447_v0  ;;  %v2381_v2 = vpop.f32.mrb[3].mxu1  ;;  %v2386_v3 = vpop.f32.mrb[5].mxu0  ;;  %v488_v4 = vadd.f32 %v3370_v58, %v453_v60 }
 0x470   :  { %v450_v5 = vpop.f32.mrb[6].mxu0 }
 0x471   :  { %v2387_v6 = vpop.f32.mrb[7].mxu0  ;;  %v491_v7 = vsel %vm490_vm3, %v488_v4, -inf  ;;  %v489_v8 = vadd.f32 %v3372_v62, %v454_v1 }
 0x472   :  { %492 = vmax.xlane.f32.xlu1 %v491_v7 }
 0x473   :  { %v494_v9 = vsel %vm490_vm3, %v489_v8, -inf }
 0x474   :  { %495 = vmax.xlane.f32.xlu0 %v494_v9 }
 0x483   :  { %564 = vrot.lane.b32.xlu1 %v3352_v42, %s3019_s21 }
 0x487   :  { %614 = vrot.lane.b32.xlu1 %v3350_v39, %s3020_s0 }
 0x4ff   :  { %v493_v10 = vpop.xlane.xlu1 %492 }
 0x500   :  { %v497_v11 = vsub.f32 %v488_v4, %v493_v10 }
 0x501   :  { %v496_v12 = vpop.xlane.xlu0 %495 }
 0x502   :  { %v499_v13 = vmul.f32 1.442695, %v497_v11  ;;  %v498_v14 = vsub.f32 %v489_v8, %v496_v12 }
 0x503   :  { %v565_v16 = vpop.permute.xlu1 %564 }
 0x504   :  { %2616 = vpow2.f32 %v499_v13  ;;  %v501_v17 = vmul.f32 1.442695, %v498_v14  ;;  %v570_v18 = vsel %vm520_vm4, %v565_v16, 0 }
 0x505   :  { %2395 = vmatpush3.bf16.msra.mxu0 %v570_v18 }
 0x506   :  { %2618 = vpow2.f32 %v501_v17  ;;  %2406 = vmatprep.subr.bf16.mxu0 %v3015_v15 }
 0x507   :  { %v615_v23 = vpop.permute.xlu1 %614 }
 0x508   :  { %v620_v36 = vsel %vm357_vm2, %v615_v23, 0 }
 0x50e   :  { %v2617_v19 = vpop.eup %2616 }
 0x50f   :  { %v503_v20 = vsel %vm490_vm3, %v2617_v19, 0.0 }
 0x510   :  { %v2619_v21 = vpop.eup %2618  ;;  %504 = vadd.xlane.f32.xlu0 %v503_v20 }
 0x511   :  { %v506_v22 = vsel %vm490_vm3, %v2619_v21, 0.0 }
 0x512   :  { %507 = vadd.xlane.f32.xlu1 %v506_v22 }
 0x523   :  { %664 = vrot.lane.b32.xlu1 %v3352_v42, %s3020_s0 }
 0x526   :  { %515 = vrot.lane.b32.xlu0 %v3350_v39, %s3019_s21 }
 0x527   :  { %662 = vrot.lane.b32.xlu1 %v3352_v42, %s3021_s24 }
 0x52a   :  { %612 = vrot.lane.b32.xlu0 %v3350_v39, %s3021_s24 }
 0x59d   :  { %v505_v24 = vpop.xlane.xlu0 %504 }
 0x59e   :  { %2620 = vrcp.f32 %v505_v24  ;;  %v2590_v24 = vld [vmem:[%s3684_s6] sm:$0xff]  }
 0x59f   :  { %v508_v25 = vpop.xlane.xlu1 %507 }
 0x5a0   :  { %2622 = vrcp.f32 %v508_v25  ;;  %v2591_v25 = vld [vmem:[%s3684_s6 + $0x8] sm:$0xff]  }
 0x5a1   :  { %v516_v26 = vpop.permute.xlu0 %515 }
 0x5a2   :  { %v522_v27 = vsel %vm520_vm4, %v516_v26, 0 }
 0x5a3   :  { %2389 = vmatpush3.bf16.msra.mxu1 %v522_v27  ;;  %v665_v35 = vpop.permute.xlu1 %664 }
 0x5a4   :  { %2400 = vmatprep.subr.bf16.mxu1 %v3015_v15  ;;  %v670_v38 = vsel %vm357_vm2, %v665_v35, 0 }
 0x5a5   :  { %v613_v40 = vpop.permute.xlu0 %612 }
 0x5a7   :  { %v663_v41 = vpop.permute.xlu1 %662 }
 0x5a8   :  { %v2621_v28 = vpop.eup %2620 }
 0x5a9   :  { %v511_v29 = vmul.f32 %v2621_v28, %v2617_v19 }
 0x5aa   :  { %v2623_v30 = vpop.eup %2622 }
 0x5ab   :  { %v512_v33 = vmul.f32 %v2623_v30, %v2619_v21  ;;  %v513_v34 = vpack.c.bf16 %v511_v29, %v511_v29 }
 0x5ad   :  { %2391 = vmatmul.mubr.msk.bf16.vlgmr.msra.gmra.mrb[4].mxu1 %vm490_vm3, %v513_v34  ;;  %v514_v37 = vpack.c.bf16 %v512_v33, %v512_v33 }
 0x5ae   :  { %2401 = vmatpush3.bf16.xpose.msra.mxu1 %v620_v36  ;;  %2402 = vmatprep.mubr.msk.bf16.mxu1 %vm3016_vm1, %v3015_v15 }
 0x5af   :  { %2397 = vmatmul.mubr.msk.bf16.vlgmr.msra.gmra.mrb[8].mxu0 %vm490_vm3, %v514_v37  ;;  %2412 = vmatprep.subr.bf16.mxu1 %v3015_v15 }
 0x5b0   :  { %2407 = vmatpush3.bf16.xpose.msra.mxu0 %v670_v38  ;;  %2408 = vmatprep.mubr.msk.bf16.mxu0 %vm3016_vm1, %v3015_v15 }
 0x5b1   :  { %2418 = vmatprep.subr.bf16.mxu0 %v3015_v15 }
 0x5b5   :  { %2403 = vmatmul.mubr.msk.bf16.vlgmr.msra.gmra.mrb[8].mxu1 %vm357_vm2, %v613_v40 }
 0x5b6   :  { %2414 = vmatprep.mubr.msk.bf16.mxu1 %vm3016_vm1, %v3015_v15 }
 0x5b7   :  { %2409 = vmatmul.mubr.msk.bf16.vlgmr.msra.gmra.mrb[12].mxu0 %vm357_vm2, %v663_v41 }
 0x5b8   :  { %2420 = vmatprep.mubr.msk.bf16.mxu0 %vm3016_vm1, %v3015_v15 }
 0x680   :  { %v3412_v43 = vpop.f32.mrb[4].mxu1 }
 0x681   :  { %v2392_v44 = vpop.f32.mrb[5].mxu1 }
 0x682   :  { %v561_v45 = vpop.f32.mrb[6].mxu1  ;;  %v3414_v46 = vpop.f32.mrb[8].mxu0 }
 0x683   :  { %v2393_v47 = vpop.f32.mrb[7].mxu1  ;;  %v2398_v48 = vpop.f32.mrb[9].mxu0 }
 0x684   :  { %v609_v49 = vpop.f32.mrb[10].mxu0  ;;  %v2226_v47 = vld [vmem:[#allocation11] ss:$0 sm:$0xff] }
 0x685   :  { %v2399_v50 = vpop.f32.mrb[11].mxu0 }
 0x688   :  { %v656_v51 = vpop.f32.mrb[8].mxu1 }
 0x689   :  { %v712_v52 = vmul.f32 0.25, %v656_v51  ;;  %v2404_v53 = vpop.f32.mrb[9].mxu1 }
 0x68a   :  { %v659_v54 = vpop.f32.mrb[10].mxu1  ;;  %v706_v55 = vpop.f32.mrb[12].mxu0 }
 0x68b   :  { %v713_v56 = vmul.f32 0.25, %v706_v55  ;;  %v2405_v57 = vpop.f32.mrb[11].mxu1  ;;  %v2410_v59 = vpop.f32.mrb[13].mxu0  ;;  %v714_v60 = vadd.f32 %v712_v52, %v3370_v58 }
 0x68c   :  { %v709_v61 = vpop.f32.mrb[14].mxu0 }
 0x68d   :  { %v2411_v63 = vpop.f32.mrb[15].mxu0  ;;  %v716_v0 = vsel %vm490_vm3, %v714_v60, -inf  ;;  %v715_v1 = vadd.f32 %v713_v56, %v3372_v62 }
 0x68e   :  { %717 = vmax.xlane.f32.xlu0 %v716_v0 }
 0x68f   :  { %v719_v2 = vsel %vm490_vm3, %v715_v1, -inf }
 0x690   :  { %720 = vmax.xlane.f32.xlu1 %v719_v2 }
 0x6a1   :  { %788 = vrot.lane.b32.xlu1 %v3352_v42, %s3022_s11 }
 0x71b   :  { %v718_v3 = vpop.xlane.xlu0 %717 }
 0x71c   :  { %v722_v4 = vsub.f32 %v714_v60, %v718_v3  ;;  %v2593_v3 = vld [vmem:[%s3688_s10 + $0x8] sm:$0xff]  }
 0x71d   :  { %v721_v5 = vpop.xlane.xlu1 %720 }
 0x71e   :  { %v724_v6 = vmul.f32 1.442695, %v722_v4  ;;  %v723_v7 = vsub.f32 %v715_v1, %v721_v5 }
 0x720   :  { %2624 = vpow2.f32 %v724_v6  ;;  %v726_v8 = vmul.f32 1.442695, %v723_v7 }
 0x721   :  { %v789_v9 = vpop.permute.xlu1 %788 }
 0x722   :  { %2626 = vpow2.f32 %v726_v8  ;;  %v794_v10 = vsel %vm520_vm4, %v789_v9, 0 }
 0x723   :  { %2419 = vmatpush3.bf16.msra.mxu0 %v794_v10 }
 0x724   :  { %2432 = vmatprep.subr.bf16.mxu0 %v3015_v15 }
 0x72a   :  { %v2625_v11 = vpop.eup %2624 }
 0x72b   :  { %v728_v12 = vsel %vm490_vm3, %v2625_v11, 0.0 }
 0x72c   :  { %v2627_v13 = vpop.eup %2626  ;;  %729 = vadd.xlane.f32.xlu0 %v728_v12  ;;  %v2230_v12 = vld [vmem:[#allocation13] ss:$0 sm:$0xff] }
 0x72d   :  { %v731_v42 = vsel %vm490_vm3, %v2627_v13, 0.0 }
 0x730   :  { %732 = vadd.xlane.f32.xlu0 %v731_v42 }
 0x746   :  { %740 = vrot.lane.b32.xlu0 %v3350_v39, %s3022_s11 }
 0x7b9   :  { %v730_v14 = vpop.xlane.xlu0 %729 }
 0x7ba   :  { %2628 = vrcp.f32 %v730_v14 }
 0x7bd   :  { %v733_v16 = vpop.xlane.xlu0 %732 }
 0x7be   :  { %2630 = vrcp.f32 %v733_v16  ;;  %v2231_v16 = vld [vmem:[#allocation14] ss:$0 sm:$0xff] }
 0x7c1   :  { %v741_v17 = vpop.permute.xlu0 %740 }
 0x7c2   :  { %v746_v18 = vsel %vm520_vm4, %v741_v17, 0 }
 0x7c3   :  { %2413 = vmatpush3.bf16.msra.mxu1 %v746_v18 }
 0x7c4   :  { %v2629_v19 = vpop.eup %2628  ;;  %2424 = vmatprep.subr.bf16.mxu1 %v3015_v15 }
 0x7c5   :  { %v736_v20 = vmul.f32 %v2629_v19, %v2625_v11 }
 0x7c7   :  { %v738_v21 = vpack.c.bf16 %v736_v20, %v736_v20 }
 0x7c8   :  { %v2631_v22 = vpop.eup %2630 }
 0x7c9   :  { %v737_v23 = vmul.f32 %v2631_v22, %v2627_v13  ;;  %2415 = vmatmul.mubr.msk.bf16.vlgmr.msra.gmra.mrb[12].mxu1 %vm490_vm3, %v738_v21  ;;  %v2594_v21 = vld [vmem:[%s3690_s12] sm:$0xff]   ;;  %v2595_v22 = vld [vmem:[%s3690_s12 + $0x8] sm:$0xff]  }
 0x7ca   :  { %2428 = vmatprep.mubr.msk.bf16.mxu1 %vm3016_vm1, %v3015_v15  ;;  %2425 = vmatpush3.bf16.msra.mxu1 %v2590_v24  ;;  %v2232_v24 = vld [vmem:[#allocation16] ss:$0 sm:$0xff] }
 0x7cb   :  { %v739_v39 = vpack.c.bf16 %v737_v23, %v737_v23  ;;  %2426 = vmatprep.subr.bf16.mxu1 %v3015_v15  ;;  %v2596_v23 = vld [vmem:[%s3690_s12 + $0x10] sm:$0xff]  }
 0x7cd   :  { %2421 = vmatmul.mubr.msk.bf16.vlgmr.msra.gmra.mrb[16].mxu0 %vm490_vm3, %v739_v39  ;;  %v2597_v39 = vld [vmem:[%s3690_s12 + $0x18] sm:$0xff]  }
 0x7ce   :  { %2436 = vmatprep.mubr.msk.bf16.mxu0 %vm3016_vm1, %v3015_v15  ;;  %2427 = vmatpush3.bf16.msra.mxu1 %v2591_v25 }
 0x7cf   :  { %2440 = vmatprep.subr.bf16.mxu1 %v3015_v15 }
 0x89c   :  { %v782_v26 = vpop.f32.mrb[12].mxu1 }
 0x89d   :  { %v2416_v27 = vpop.f32.mrb[13].mxu1 }
 0x89e   :  { %v785_v28 = vpop.f32.mrb[14].mxu1 }
 0x89f   :  { %v2417_v29 = vpop.f32.mrb[15].mxu1 }
 0x8a0   :  { %v830_v30 = vpop.f32.mrb[16].mxu0 }
 0x8a1   :  { %v2578_v33 = vpack.i.bf16 %v830_v30, %v782_v26  ;;  %v2422_v34 = vpop.f32.mrb[17].mxu0 }
 0x8a2   :  { %v833_v35 = vpop.f32.mrb[18].mxu0 }
 0x8a3   :  { %2579 = vrot.lane.b32.xlu1 %v2578_v33, %s3715_s3  ;;  %v2423_v36 = vpop.f32.mrb[19].mxu0 }
 0x915   :  { %v2580_v37 = vpop.permute.xlu1 %2579 }
 0x916   :  { %v2582_v38 = vunpack.i.h.bf16 %v2580_v37  ;;  %v2581_v40 = vunpack.i.l.bf16 %v2580_v37 }
 0x918   :  { %v845_v41 = vsel %vm357_vm2, %v3414_v46, %v2582_v38  ;;  %v844_v44 = vsel %vm357_vm2, %v3412_v43, %v2581_v40 }
 0x919   :  { %v850_v45 = vpack.c.bf16 %v845_v41, %v844_v44 }
 0x91b   :  { %2429 = vmatmul.mubr.msk.bf16.vlgmr.msra.gmra.mrb[16].mxu1 %vm239_vm0, %v850_v45 }
 0x91c   :  { %2448 = vmatprep.mubr.msk.bf16.mxu1 %vm3016_vm1, %v3015_v15  ;;  %2441 = vmatpush3.bf16.msra.mxu1 %v2594_v21 }
 0x91d   :  { %2442 = vmatprep.subr.bf16.mxu1 %v3015_v15 }
 0x920   :  { %2443 = vmatpush3.bf16.msra.mxu1 %v2595_v22 }
 0x921   :  { %2444 = vmatprep.subr.bf16.mxu1 %v3015_v15 }
 0x924   :  { %2445 = vmatpush3.bf16.msra.mxu1 %v2596_v23 }
 0x925   :  { %2446 = vmatprep.subr.bf16.mxu1 %v3015_v15 }
 0x928   :  { %2447 = vmatpush3.bf16.msra.mxu1 %v2597_v39 }
 0x929   :  { %2466 = vmatprep.subr.bf16.mxu1 %v3015_v15 }
 0x9ee   :  { %v907_v48 = vpop.f32.mrb[16].mxu1 }
 0x9ef   :  { %v908_v49 = vadd.f32 %v2226_v47, %v907_v48  ;;  %v2430_v50 = vpop.f32.mrb[17].mxu1 }
 0x9f0   :  { %v910_v51 = vpop.f32.mrb[18].mxu1 }
 0x9f1   :  { %v911_v52 = vadd.f32 %v2226_v47, %v910_v51  ;;  %v2431_v53 = vpop.f32.mrb[19].mxu1  ;;  %v914_v54 = vadd.f32 %v908_v49, %v3341_v31 }
 0x9f3   :  { %v918_v46 = vsel %vm239_vm0, %v914_v54, 0.0  ;;  %v915_v55 = vadd.f32 %v911_v52, %v3343_v32  ;;  %v2592_v32 = vld [vmem:[%s3688_s10] sm:$0xff]  }
 0x9f4   :  { %919 = vadd.xlane.f32.xlu1 %v918_v46  ;;  %2433 = vmatpush3.bf16.msra.mxu0 %v2592_v32 }
 0x9f5   :  { %v921_v43 = vsel %vm239_vm0, %v915_v55, 0.0  ;;  %2434 = vmatprep.subr.bf16.mxu0 %v3015_v15 }
 0x9f6   :  { %922 = vadd.xlane.f32.xlu0 %v921_v43 }
 0x9f8   :  { %2435 = vmatpush3.bf16.msra.mxu0 %v2593_v3 }
 0x9f9   :  { %2452 = vmatprep.subr.bf16.mxu0 %v3015_v15 }
 0xa81   :  { %v920_v56 = vpop.xlane.xlu1 %919 }
 0xa82   :  { %v924_v57 = vmul.f32 0.03125, %v920_v56 }
 0xa83   :  { %v923_v59 = vpop.xlane.xlu0 %922 }
 0xa84   :  { %v926_v60 = vsub.f32 %v914_v54, %v924_v57  ;;  %v925_v61 = vmul.f32 0.03125, %v923_v59 }
 0xa86   :  { %v927_v63 = vsub.f32 %v915_v55, %v925_v61  ;;  %v928_v0 = vmul.f32 %v926_v60, %v926_v60  ;;  %v2236_v55 = vld [vmem:[#allocation17] ss:$0 sm:$0xff] }
 0xa88   :  { %v930_v1 = vsel %vm239_vm0, %v928_v0, 0.0  ;;  %v929_v2 = vmul.f32 %v927_v63, %v927_v63 }
 0xa89   :  { %931 = vadd.xlane.f32.xlu0 %v930_v1 }
 0xa8a   :  { %v933_v31 = vsel %vm239_vm0, %v929_v2, 0.0 }
 0xa8d   :  { %934 = vadd.xlane.f32.xlu0 %v933_v31 }
 0xb16   :  { %v932_v4 = vpop.xlane.xlu0 %931 }
 0xb17   :  { %v936_v5 = vmul.f32 0.03125, %v932_v4 }
 0xb19   :  { %v938_v6 = vadd.f32 1e-12, %v936_v5 }
 0xb1a   :  { %v935_v7 = vpop.xlane.xlu0 %934 }
 0xb1b   :  { %2632 = vrsqrt.f32 %v938_v6  ;;  %v937_v8 = vmul.f32 0.03125, %v935_v7 }
 0xb1d   :  { %v939_v9 = vadd.f32 1e-12, %v937_v8 }
 0xb1f   :  { %2634 = vrsqrt.f32 %v939_v9 }
 0xb25   :  { %v2633_v10 = vpop.eup %2632 }
 0xb26   :  { %v942_v11 = vmul.f32 %v2633_v10, %v926_v60 }
 0xb28   :  { %v950_v42 = vmul.f32 %v2230_v12, %v942_v11  ;;  %v2598_v11 = vld [vmem:[%s3716_s13 + $0x10] sm:$0xff]  }
 0xb29   :  { %v2635_v13 = vpop.eup %2634 }
 0xb2a   :  { %v943_v14 = vmul.f32 %v2635_v13, %v927_v63  ;;  %v958_v18 = vadd.f32 %v2231_v16, %v950_v42 }
 0xb2c   :  { %v951_v17 = vmul.f32 %v2230_v12, %v943_v14  ;;  %v2599_v12 = vld [vmem:[%s3716_s13 + $0x18] sm:$0xff]  }
 0xb2e   :  { %v959_v19 = vadd.f32 %v2231_v16, %v951_v17 }
 0xb30   :  { %v964_v20 = vpack.c.bf16 %v959_v19, %v958_v18 }
 0xb32   :  { %2437 = vmatmul.mubr.msk.bf16.vlgmr.msra.gmra.mrb[20].mxu0 %vm239_vm0, %v964_v20  ;;  %v2242_v20 = vld [vmem:[#allocation19] ss:$0 sm:$0xff] }
 0xb33   :  { %2456 = vmatprep.mubr.msk.bf16.mxu0 %vm3016_vm1, %v3015_v15  ;;  %2453 = vmatpush3.bf16.msra.mxu0 %v2598_v11 }
 0xb34   :  { %2454 = vmatprep.subr.bf16.mxu0 %v3015_v15 }
 0xb37   :  { %2455 = vmatpush3.bf16.msra.mxu0 %v2599_v12 }
 0xb38   :  { %2460 = vmatprep.subr.bf16.mxu0 %v3015_v15 }
 0xc05   :  { %v1021_v25 = vpop.f32.mrb[20].mxu0 }
 0xc06   :  { %v1022_v26 = vadd.f32 %v2232_v24, %v1021_v25  ;;  %v2438_v27 = vpop.f32.mrb[21].mxu0 }
 0xc07   :  { %v1024_v28 = vpop.f32.mrb[22].mxu0 }
 0xc08   :  { %v1028_v29 = vmul.f32 %v1022_v26, %v1022_v26  ;;  %v1025_v30 = vadd.f32 %v2232_v24, %v1024_v28  ;;  %v2439_v33 = vpop.f32.mrb[23].mxu0  ;;  %v2243_v24 = vld [vmem:[#allocation20] ss:$0 sm:$0xff] }
 0xc0a   :  { %v1030_v34 = vmul.f32 %v1028_v29, %v1022_v26  ;;  %v1029_v35 = vmul.f32 %v1025_v30, %v1025_v30  ;;  %v2248_v29 = vld [vmem:[#allocation10 + $0x1] ss:$0 sm:$0xff] }
 0xc0c   :  { %v1032_v36 = vmul.f32 0.044715, %v1030_v34  ;;  %v1031_v37 = vmul.f32 %v1029_v35, %v1025_v30 }
 0xc0e   :  { %v1034_v38 = vadd.f32 %v1032_v36, %v1022_v26  ;;  %v1033_v40 = vmul.f32 0.044715, %v1031_v37 }
 0xc10   :  { %v1036_v41 = vmul.f32 0.7978846, %v1034_v38  ;;  %v1035_v44 = vadd.f32 %v1033_v40, %v1025_v30 }
 0xc12   :  { %2636 = vtanh.f32 %v1036_v41  ;;  %v1037_v45 = vmul.f32 0.7978846, %v1035_v44 }
 0xc14   :  { %2638 = vtanh.f32 %v1037_v45 }
 0xc1c   :  { %v2637_v47 = vpop.eup %2636 }
 0xc1d   :  { %v1040_v48 = vadd.f32 1.0, %v2637_v47 }
 0xc1e   :  { %v2639_v49 = vpop.eup %2638 }
 0xc1f   :  { %v1042_v50 = vmul.f32 0.5, %v1040_v48  ;;  %v1041_v51 = vadd.f32 1.0, %v2639_v49 }
 0xc21   :  { %v1043_v52 = vmul.f32 0.5, %v1041_v51  ;;  %v1044_v53 = vmul.f32 %v1042_v50, %v1022_v26 }
 0xc23   :  { %v1045_v54 = vmul.f32 %v1043_v52, %v1025_v30 }
 0xc25   :  { %v1054_v46 = vpack.c.bf16 %v1045_v54, %v1044_v53 }
 0xc27   :  { %2449 = vmatmul.mubr.msk.bf16.vlgmr.msra.gmra.mrb[20].mxu1 %vm1086_vm5, %v1054_v46 }
 0xc28   :  { %2468 = vmatprep.mubr.msk.bf16.mxu1 %vm3016_vm1, %v3015_v15 }
 0xcfa   :  { %v1124_v43 = vpop.f32.mrb[20].mxu1 }
 0xcfb   :  { %v1125_v56 = vadd.f32 %v2236_v55, %v1124_v43  ;;  %v2450_v57 = vpop.f32.mrb[21].mxu1 }
 0xcfc   :  { %v1127_v59 = vpop.f32.mrb[22].mxu1 }
 0xcfd   :  { %v1128_v60 = vadd.f32 %v2236_v55, %v1127_v59  ;;  %v2451_v61 = vpop.f32.mrb[23].mxu1  ;;  %v1131_v63 = vadd.f32 %v1125_v56, %v958_v18 }
 0xcff   :  { %v1135_v0 = vsel %vm239_vm0, %v1131_v63, 0.0  ;;  %v1132_v1 = vadd.f32 %v1128_v60, %v959_v19 }
 0xd00   :  { %1136 = vadd.xlane.f32.xlu1 %v1135_v0 }
 0xd01   :  { %v1138_v2 = vsel %vm239_vm0, %v1132_v1, 0.0 }
 0xd02   :  { %1139 = vadd.xlane.f32.xlu0 %v1138_v2 }
 0xd8d   :  { %v1137_v31 = vpop.xlane.xlu1 %1136 }
 0xd8e   :  { %v1141_v32 = vmul.f32 0.03125, %v1137_v31 }
 0xd8f   :  { %v1140_v3 = vpop.xlane.xlu0 %1139 }
 0xd90   :  { %v1143_v4 = vsub.f32 %v1131_v63, %v1141_v32  ;;  %v1142_v5 = vmul.f32 0.03125, %v1140_v3 }
 0xd92   :  { %v1144_v6 = vsub.f32 %v1132_v1, %v1142_v5  ;;  %v1145_v7 = vmul.f32 %v1143_v4, %v1143_v4 }
 0xd94   :  { %v1147_v8 = vsel %vm239_vm0, %v1145_v7, 0.0  ;;  %v1146_v9 = vmul.f32 %v1144_v6, %v1144_v6 }
 0xd95   :  { %1148 = vadd.xlane.f32.xlu1 %v1147_v8 }
 0xd96   :  { %v1150_v10 = vsel %vm239_vm0, %v1146_v9, 0.0 }
 0xd97   :  { %1151 = vadd.xlane.f32.xlu0 %v1150_v10 }
 0xe22   :  { %v1149_v13 = vpop.xlane.xlu1 %1148 }
 0xe23   :  { %v1153_v42 = vmul.f32 0.03125, %v1149_v13 }
 0xe24   :  { %v1152_v14 = vpop.xlane.xlu0 %1151 }
 0xe25   :  { %v1155_v16 = vadd.f32 1e-12, %v1153_v42  ;;  %v1154_v17 = vmul.f32 0.03125, %v1152_v14 }
 0xe27   :  { %2640 = vrsqrt.f32 %v1155_v16  ;;  %v1156_v18 = vadd.f32 1e-12, %v1154_v17 }
 0xe29   :  { %2642 = vrsqrt.f32 %v1156_v18 }
 0xe31   :  { %v2641_v19 = vpop.eup %2640 }
 0xe32   :  { %v1159_v21 = vmul.f32 %v2641_v19, %v1143_v4 }
 0xe33   :  { %v2643_v22 = vpop.eup %2642 }
 0xe34   :  { %v1167_v23 = vmul.f32 %v2242_v20, %v1159_v21  ;;  %v1160_v39 = vmul.f32 %v2643_v22, %v1144_v6 }
 0xe36   :  { %v1168_v25 = vmul.f32 %v2242_v20, %v1160_v39  ;;  %v3500_v26 = vadd.f32 %v2243_v24, %v1167_v23 }
 0xe38   :  { %v3502_v27 = vadd.f32 %v2243_v24, %v1168_v25 }
 0xe3a   :  { %v1182_v28 = vpack.c.bf16 %v3502_v27, %v3500_v26 }
 0xe3c   :  { %2457 = vmatmul.mubr.msk.bf16.vlgmr.msra.gmra.mrb[24].mxu0 %vm239_vm0, %v1182_v28 }
 0xe3d   :  { %2462 = vmatprep.mubr.msk.bf16.mxu0 %vm3016_vm1, %v3015_v15 }
 0xf0f   :  { %v1240_v30 = vpop.f32.mrb[24].mxu0 }
 0xf10   :  { %v1241_v33 = vadd.f32 %v2248_v29, %v1240_v30  ;;  %v2458_v34 = vpop.f32.mrb[25].mxu0 }
 0xf11   :  { %v1243_v35 = vpop.f32.mrb[26].mxu0 }
 0xf12   :  { %v3509_v36 = vpack.c.bf16 %v1241_v33, %v1241_v33  ;;  %v1244_v37 = vadd.f32 %v2248_v29, %v1243_v35  ;;  %v2459_v38 = vpop.f32.mrb[27].mxu0 }
 0xf14   :  { %v3511_v40 = vpack.c.bf16 %v1244_v37, %v1244_v37  ;;  %1250 = vrot.lane.b32.xlu1 %v3509_v36, %s3017_s23 }
 0xf16   :  { %1299 = vrot.lane.b32.xlu0 %v3511_v40, %s3017_s23 }
 0xf86   :  { %v1251_v41 = vpop.permute.xlu1 %1250 }
 0xf87   :  { %v1256_v44 = vsel %vm357_vm2, %v1251_v41, 0 }
 0xf88   :  { %2461 = vmatpush3.bf16.xpose.msra.mxu0 %v1256_v44  ;;  %v1300_v45 = vpop.permute.xlu0 %1299 }
 0xf89   :  { %v1305_v47 = vsel %vm357_vm2, %v1300_v45, 0  ;;  %2472 = vmatprep.subr.bf16.mxu0 %v3015_v15 }
 0xf8a   :  { %2467 = vmatpush3.bf16.xpose.msra.mxu1 %v1305_v47 }
 0xf8b   :  { %2478 = vmatprep.subr.bf16.mxu1 %v3015_v15 }
 0xf8f   :  { %2463 = vmatmul.mubr.msk.bf16.vlgmr.msra.gmra.mrb[28].mxu0 %vm357_vm2, %v3509_v36 }
 0xf90   :  { %2474 = vmatprep.mubr.msk.bf16.mxu0 %vm3016_vm1, %v3015_v15 }
 0xf91   :  { %2469 = vmatmul.mubr.msk.bf16.vlgmr.msra.gmra.mrb[24].mxu1 %vm357_vm2, %v3511_v40 }
 0xf92   :  { %2480 = vmatprep.mubr.msk.bf16.mxu1 %vm3016_vm1, %v3015_v15 }
0x1062   :  { %v1292_v48 = vpop.f32.mrb[28].mxu0 }
0x1063   :  { %v1347_v49 = vmul.f32 0.25, %v1292_v48  ;;  %v2464_v50 = vpop.f32.mrb[29].mxu0 }
0x1064   :  { %v1295_v51 = vpop.f32.mrb[30].mxu0  ;;  %v1341_v52 = vpop.f32.mrb[24].mxu1 }
0x1065   :  { %v1348_v53 = vmul.f32 0.25, %v1341_v52  ;;  %v2465_v54 = vpop.f32.mrb[31].mxu0  ;;  %v2470_v46 = vpop.f32.mrb[25].mxu1  ;;  %v1349_v55 = vadd.f32 %v1347_v49, %v3370_v58 }
0x1066   :  { %v1344_v43 = vpop.f32.mrb[26].mxu1 }
0x1067   :  { %v2471_v56 = vpop.f32.mrb[27].mxu1  ;;  %v1351_v57 = vsel %vm490_vm3, %v1349_v55, -inf  ;;  %v1350_v59 = vadd.f32 %v1348_v53, %v3372_v62 }
0x1068   :  { %1352 = vmax.xlane.f32.xlu1 %v1351_v57 }
0x1069   :  { %v1354_v60 = vsel %vm490_vm3, %v1350_v59, -inf }
0x106a   :  { %1355 = vmax.xlane.f32.xlu0 %v1354_v60 }
0x1079   :  { %1375 = vrot.lane.b32.xlu1 %v3509_v36, %s3019_s21 }
0x10f5   :  { %v1353_v61 = vpop.xlane.xlu1 %1352 }
0x10f6   :  { %v1357_v63 = vsub.f32 %v1349_v55, %v1353_v61 }
0x10f7   :  { %v1356_v0 = vpop.xlane.xlu0 %1355 }
0x10f8   :  { %v1359_v1 = vmul.f32 1.442695, %v1357_v63  ;;  %v1358_v2 = vsub.f32 %v1350_v59, %v1356_v0 }
0x10f9   :  { %v1376_v31 = vpop.permute.xlu1 %1375 }
0x10fa   :  { %2644 = vpow2.f32 %v1359_v1  ;;  %v1361_v32 = vmul.f32 1.442695, %v1358_v2  ;;  %v1381_v3 = vsel %vm520_vm4, %v1376_v31, 0 }
0x10fb   :  { %2473 = vmatpush3.bf16.msra.mxu0 %v1381_v3 }
0x10fc   :  { %2646 = vpow2.f32 %v1361_v32  ;;  %2484 = vmatprep.subr.bf16.mxu0 %v3015_v15 }
0x1104   :  { %v2645_v4 = vpop.eup %2644 }
0x1105   :  { %v1363_v5 = vsel %vm490_vm3, %v2645_v4, 0.0 }
0x1106   :  { %v2647_v6 = vpop.eup %2646  ;;  %1364 = vadd.xlane.f32.xlu1 %v1363_v5 }
0x1107   :  { %v1366_v7 = vsel %vm490_vm3, %v2647_v6, 0.0 }
0x1108   :  { %1367 = vadd.xlane.f32.xlu0 %v1366_v7  ;;  %v2600_v7 = vld [vmem:[%s3684_s6 + $0x10] sm:$0xff]  }
0x1117   :  { %1473 = vrot.lane.b32.xlu1 %v3509_v36, %s3020_s0 }
0x111b   :  { %1523 = vrot.lane.b32.xlu1 %v3511_v40, %s3020_s0 }
0x111e   :  { %1423 = vrot.lane.b32.xlu0 %v3511_v40, %s3019_s21 }
0x111f   :  { %1471 = vrot.lane.b32.xlu1 %v3509_v36, %s3021_s24 }
0x1122   :  { %1521 = vrot.lane.b32.xlu0 %v3511_v40, %s3021_s24 }
0x1193   :  { %v1365_v8 = vpop.xlane.xlu1 %1364 }
0x1194   :  { %2648 = vrcp.f32 %v1365_v8  ;;  %v2601_v8 = vld [vmem:[%s3684_s6 + $0x18] sm:$0xff]  }
0x1195   :  { %v1368_v9 = vpop.xlane.xlu0 %1367 }
0x1196   :  { %2650 = vrcp.f32 %v1368_v9 }
0x1197   :  { %v1474_v12 = vpop.permute.xlu1 %1473 }
0x1198   :  { %v1479_v19 = vsel %vm357_vm2, %v1474_v12, 0 }
0x1199   :  { %v1424_v10 = vpop.permute.xlu0 %1423 }
0x119a   :  { %v1429_v11 = vsel %vm520_vm4, %v1424_v10, 0 }
0x119b   :  { %2479 = vmatpush3.bf16.msra.mxu1 %v1429_v11  ;;  %v1524_v18 = vpop.permute.xlu1 %1523 }
0x119c   :  { %2490 = vmatprep.subr.bf16.mxu1 %v3015_v15  ;;  %v1529_v21 = vsel %vm357_vm2, %v1524_v18, 0 }
0x119d   :  { %v1522_v23 = vpop.permute.xlu0 %1521 }
0x119e   :  { %v2649_v13 = vpop.eup %2648 }
0x119f   :  { %v1371_v42 = vmul.f32 %v2649_v13, %v2645_v4  ;;  %v1472_v22 = vpop.permute.xlu1 %1471 }
0x11a0   :  { %v2651_v14 = vpop.eup %2650 }
0x11a1   :  { %v1372_v16 = vmul.f32 %v2651_v14, %v2647_v6  ;;  %v1373_v17 = vpack.c.bf16 %v1371_v42, %v1371_v42 }
0x11a3   :  { %2475 = vmatmul.mubr.msk.bf16.vlgmr.msra.gmra.mrb[32].mxu0 %vm490_vm3, %v1373_v17  ;;  %v1374_v20 = vpack.c.bf16 %v1372_v16, %v1372_v16 }
0x11a4   :  { %2485 = vmatpush3.bf16.xpose.msra.mxu0 %v1479_v19  ;;  %2486 = vmatprep.mubr.msk.bf16.mxu0 %vm3016_vm1, %v3015_v15 }
0x11a5   :  { %2481 = vmatmul.mubr.msk.bf16.vlgmr.msra.gmra.mrb[28].mxu1 %vm490_vm3, %v1374_v20  ;;  %2496 = vmatprep.subr.bf16.mxu0 %v3015_v15 }
0x11a6   :  { %2491 = vmatpush3.bf16.xpose.msra.mxu1 %v1529_v21  ;;  %2492 = vmatprep.mubr.msk.bf16.mxu1 %vm3016_vm1, %v3015_v15 }
0x11a7   :  { %2502 = vmatprep.subr.bf16.mxu1 %v3015_v15 }
0x11ab   :  { %2487 = vmatmul.mubr.msk.bf16.vlgmr.msra.gmra.mrb[36].mxu0 %vm357_vm2, %v1472_v22 }
0x11ac   :  { %2498 = vmatprep.mubr.msk.bf16.mxu0 %vm3016_vm1, %v3015_v15 }
0x11ad   :  { %2493 = vmatmul.mubr.msk.bf16.vlgmr.msra.gmra.mrb[32].mxu1 %vm357_vm2, %v1522_v23 }
0x11ae   :  { %2504 = vmatprep.mubr.msk.bf16.mxu1 %vm3016_vm1, %v3015_v15 }
0x1276   :  { %v3567_v39 = vpop.f32.mrb[32].mxu0 }
0x1277   :  { %v2476_v24 = vpop.f32.mrb[33].mxu0 }
0x1278   :  { %v1420_v25 = vpop.f32.mrb[34].mxu0  ;;  %v3569_v28 = vpop.f32.mrb[28].mxu1  ;;  %v2264_v24 = vld [vmem:[#allocation11 + $0x1] ss:$0 sm:$0xff] }
0x1279   :  { %v2477_v29 = vpop.f32.mrb[35].mxu0  ;;  %v2482_v30 = vpop.f32.mrb[29].mxu1 }
0x127a   :  { %v1468_v33 = vpop.f32.mrb[30].mxu1 }
0x127b   :  { %v2483_v34 = vpop.f32.mrb[31].mxu1 }
0x127e   :  { %v1515_v35 = vpop.f32.mrb[36].mxu0 }
0x127f   :  { %v1571_v37 = vmul.f32 0.25, %v1515_v35  ;;  %v2488_v38 = vpop.f32.mrb[37].mxu0 }
0x1280   :  { %v1518_v41 = vpop.f32.mrb[38].mxu0  ;;  %v1565_v44 = vpop.f32.mrb[32].mxu1 }
0x1281   :  { %v1572_v45 = vmul.f32 0.25, %v1565_v44  ;;  %v2489_v47 = vpop.f32.mrb[39].mxu0  ;;  %v2494_v48 = vpop.f32.mrb[33].mxu1  ;;  %v1573_v49 = vadd.f32 %v1571_v37, %v3370_v58 }
0x1282   :  { %v1568_v50 = vpop.f32.mrb[34].mxu1 }
0x1283   :  { %v2495_v51 = vpop.f32.mrb[35].mxu1  ;;  %v1575_v52 = vsel %vm490_vm3, %v1573_v49, -inf  ;;  %v1574_v53 = vadd.f32 %v1572_v45, %v3372_v62 }
0x1284   :  { %1576 = vmax.xlane.f32.xlu1 %v1575_v52 }
0x1285   :  { %v1578_v54 = vsel %vm490_vm3, %v1574_v53, -inf }
0x1286   :  { %1579 = vmax.xlane.f32.xlu0 %v1578_v54 }
0x1295   :  { %1599 = vrot.lane.b32.xlu1 %v3509_v36, %s3022_s11 }
0x1311   :  { %v1577_v46 = vpop.xlane.xlu1 %1576 }
0x1312   :  { %v1581_v55 = vsub.f32 %v1573_v49, %v1577_v46 }
0x1313   :  { %v1580_v43 = vpop.xlane.xlu0 %1579 }
0x1314   :  { %v1583_v56 = vmul.f32 1.442695, %v1581_v55  ;;  %v1582_v57 = vsub.f32 %v1574_v53, %v1580_v43  ;;  %v2603_v53 = vld [vmem:[%s3688_s10 + $0x18] sm:$0xff]  }
0x1315   :  { %v1600_v59 = vpop.permute.xlu1 %1599 }
0x1316   :  { %2652 = vpow2.f32 %v1583_v56  ;;  %v1585_v58 = vmul.f32 1.442695, %v1582_v57  ;;  %v1605_v60 = vsel %vm520_vm4, %v1600_v59, 0 }
0x1317   :  { %2497 = vmatpush3.bf16.msra.mxu0 %v1605_v60 }
0x1318   :  { %2654 = vpow2.f32 %v1585_v58  ;;  %2508 = vmatprep.subr.bf16.mxu0 %v3015_v15  ;;  %v2268_v58 = vld [vmem:[#allocation13 + $0x1] ss:$0 sm:$0xff] }
0x1320   :  { %v2653_v62 = vpop.eup %2652 }
0x1321   :  { %v1587_v61 = vsel %vm490_vm3, %v2653_v62, 0.0 }
0x1322   :  { %v2655_v63 = vpop.eup %2654  ;;  %1588 = vadd.xlane.f32.xlu0 %v1587_v61 }
0x1323   :  { %v1590_v36 = vsel %vm490_vm3, %v2655_v63, 0.0 }
0x1326   :  { %1591 = vadd.xlane.f32.xlu0 %v1590_v36  ;;  %v2269_v36 = vld [vmem:[#allocation14 + $0x1] ss:$0 sm:$0xff] }
0x133c   :  { %1647 = vrot.lane.b32.xlu0 %v3511_v40, %s3022_s11 }
0x13af   :  { %v1589_v0 = vpop.xlane.xlu0 %1588 }
0x13b0   :  { %2656 = vrcp.f32 %v1589_v0 }
0x13b3   :  { %v1592_v1 = vpop.xlane.xlu0 %1591 }
0x13b4   :  { %2658 = vrcp.f32 %v1592_v1 }
0x13b7   :  { %v1648_v2 = vpop.permute.xlu0 %1647 }
0x13b8   :  { %v1653_v31 = vsel %vm520_vm4, %v1648_v2, 0 }
0x13b9   :  { %2503 = vmatpush3.bf16.msra.mxu1 %v1653_v31 }
0x13ba   :  { %v2657_v32 = vpop.eup %2656  ;;  %2516 = vmatprep.subr.bf16.mxu1 %v3015_v15 }
0x13bb   :  { %v1595_v3 = vmul.f32 %v2657_v32, %v2653_v62  ;;  %v2604_v32 = vld [vmem:[%s3690_s12 + $0x20] sm:$0xff]  }
0x13bd   :  { %v1597_v4 = vpack.c.bf16 %v1595_v3, %v1595_v3  ;;  %v2605_v3 = vld [vmem:[%s3690_s12 + $0x28] sm:$0xff]  }
0x13be   :  { %v2659_v5 = vpop.eup %2658 }
0x13bf   :  { %v1596_v6 = vmul.f32 %v2659_v5, %v2655_v63  ;;  %2499 = vmatmul.mubr.msk.bf16.vlgmr.msra.gmra.mrb[40].mxu0 %vm490_vm3, %v1597_v4  ;;  %v2606_v4 = vld [vmem:[%s3690_s12 + $0x30] sm:$0xff]   ;;  %v2607_v5 = vld [vmem:[%s3690_s12 + $0x38] sm:$0xff]  }
0x13c0   :  { %2512 = vmatprep.mubr.msk.bf16.mxu0 %vm3016_vm1, %v3015_v15  ;;  %2509 = vmatpush3.bf16.msra.mxu0 %v2600_v7 }
0x13c1   :  { %v1598_v40 = vpack.c.bf16 %v1596_v6, %v1596_v6  ;;  %2510 = vmatprep.subr.bf16.mxu0 %v3015_v15  ;;  %v2274_v6 = vld [vmem:[#allocation16 + $0x1] ss:$0 sm:$0xff] }
0x13c3   :  { %2505 = vmatmul.mubr.msk.bf16.vlgmr.msra.gmra.mrb[36].mxu1 %vm490_vm3, %v1598_v40 }
0x13c4   :  { %2520 = vmatprep.mubr.msk.bf16.mxu1 %vm3016_vm1, %v3015_v15  ;;  %2511 = vmatpush3.bf16.msra.mxu0 %v2601_v8 }
0x13c5   :  { %2524 = vmatprep.subr.bf16.mxu0 %v3015_v15 }
0x1492   :  { %v1641_v9 = vpop.f32.mrb[40].mxu0 }
0x1493   :  { %v2500_v10 = vpop.f32.mrb[41].mxu0 }
0x1494   :  { %v1644_v11 = vpop.f32.mrb[42].mxu0 }
0x1495   :  { %v2501_v12 = vpop.f32.mrb[43].mxu0 }
0x1496   :  { %v1689_v13 = vpop.f32.mrb[36].mxu1 }
0x1497   :  { %v2583_v42 = vpack.i.bf16 %v1689_v13, %v1641_v9  ;;  %v2506_v14 = vpop.f32.mrb[37].mxu1 }
0x1498   :  { %v1692_v16 = vpop.f32.mrb[38].mxu1 }
0x1499   :  { %v2507_v17 = vpop.f32.mrb[39].mxu1  ;;  %2584 = vrot.lane.b32.xlu1 %v2583_v42, %s3715_s3 }
0x150b   :  { %v2585_v18 = vpop.permute.xlu1 %2584 }
0x150c   :  { %v2587_v19 = vunpack.i.h.bf16 %v2585_v18  ;;  %v2586_v20 = vunpack.i.l.bf16 %v2585_v18 }
0x150e   :  { %v1704_v21 = vsel %vm357_vm2, %v3569_v28, %v2587_v19  ;;  %v1703_v22 = vsel %vm357_vm2, %v3567_v39, %v2586_v20 }
0x150f   :  { %v1710_v23 = vpack.c.bf16 %v1704_v21, %v1703_v22 }
0x1511   :  { %2513 = vmatmul.mubr.msk.bf16.vlgmr.msra.gmra.mrb[44].mxu0 %vm239_vm0, %v1710_v23 }
0x1512   :  { %2532 = vmatprep.mubr.msk.bf16.mxu0 %vm3016_vm1, %v3015_v15  ;;  %2525 = vmatpush3.bf16.msra.mxu0 %v2604_v32  ;;  %v2293_v32 = vld [vmem:[#allocation20 + $0x1] ss:$0 sm:$0xff] }
0x1513   :  { %2526 = vmatprep.subr.bf16.mxu0 %v3015_v15 }
0x1516   :  { %2527 = vmatpush3.bf16.msra.mxu0 %v2605_v3 }
0x1517   :  { %2528 = vmatprep.subr.bf16.mxu0 %v3015_v15 }
0x151a   :  { %2529 = vmatpush3.bf16.msra.mxu0 %v2606_v4 }
0x151b   :  { %2530 = vmatprep.subr.bf16.mxu0 %v3015_v15 }
0x151e   :  { %2531 = vmatpush3.bf16.msra.mxu0 %v2607_v5 }
0x15e4   :  { %v1768_v25 = vpop.f32.mrb[44].mxu0 }
0x15e5   :  { %v1769_v29 = vadd.f32 %v2264_v24, %v1768_v25  ;;  %v2514_v30 = vpop.f32.mrb[45].mxu0 }
0x15e6   :  { %v1771_v33 = vpop.f32.mrb[46].mxu0 }
0x15e7   :  { %v1772_v34 = vadd.f32 %v2264_v24, %v1771_v33  ;;  %v2515_v35 = vpop.f32.mrb[47].mxu0  ;;  %v1775_v37 = vadd.f32 %v1769_v29, %v3500_v26 }
0x15e9   :  { %v1781_v28 = vsel %vm239_vm0, %v1775_v37, 0.0  ;;  %v1776_v38 = vadd.f32 %v1772_v34, %v3502_v27  ;;  %v2602_v27 = vld [vmem:[%s3688_s10 + $0x10] sm:$0xff]  }
0x15ea   :  { %1782 = vadd.xlane.f32.xlu1 %v1781_v28  ;;  %2517 = vmatpush3.bf16.msra.mxu1 %v2602_v27 }
0x15eb   :  { %v1784_v39 = vsel %vm239_vm0, %v1776_v38, 0.0  ;;  %2518 = vmatprep.subr.bf16.mxu1 %v3015_v15 }
0x15ec   :  { %1785 = vadd.xlane.f32.xlu0 %v1784_v39 }
0x15ee   :  { %2519 = vmatpush3.bf16.msra.mxu1 %v2603_v53 }
0x15ef   :  { %2536 = vmatprep.subr.bf16.mxu1 %v3015_v15 }
0x1677   :  { %v1783_v41 = vpop.xlane.xlu1 %1782 }
0x1678   :  { %v1787_v44 = vmul.f32 0.03125, %v1783_v41 }
0x1679   :  { %v1786_v45 = vpop.xlane.xlu0 %1785 }
0x167a   :  { %v1789_v47 = vsub.f32 %v1775_v37, %v1787_v44  ;;  %v1788_v48 = vmul.f32 0.03125, %v1786_v45  ;;  %v2286_v37 = vld [vmem:[#allocation17 + $0x1] ss:$0 sm:$0xff] }
0x167c   :  { %v1790_v49 = vsub.f32 %v1776_v38, %v1788_v48  ;;  %v1791_v50 = vmul.f32 %v1789_v47, %v1789_v47 }
0x167e   :  { %v1793_v51 = vsel %vm239_vm0, %v1791_v50, 0.0  ;;  %v1792_v52 = vmul.f32 %v1790_v49, %v1790_v49 }
0x167f   :  { %1794 = vadd.xlane.f32.xlu0 %v1793_v51 }
0x1680   :  { %v1796_v26 = vsel %vm239_vm0, %v1792_v52, 0.0 }
0x1681   :  { %1797 = vadd.xlane.f32.xlu1 %v1796_v26 }
0x170c   :  { %v1795_v54 = vpop.xlane.xlu0 %1794 }
0x170d   :  { %v1799_v46 = vmul.f32 0.03125, %v1795_v54 }
0x170e   :  { %v1798_v55 = vpop.xlane.xlu1 %1797 }
0x170f   :  { %v1801_v43 = vadd.f32 1e-12, %v1799_v46  ;;  %v1800_v56 = vmul.f32 0.03125, %v1798_v55 }
0x1711   :  { %2660 = vrsqrt.f32 %v1801_v43  ;;  %v1802_v57 = vadd.f32 1e-12, %v1800_v56 }
0x1713   :  { %2662 = vrsqrt.f32 %v1802_v57  ;;  %v2608_v57 = vld [vmem:[%s3694_s16] sm:$0xff]  }
0x171b   :  { %v2661_v59 = vpop.eup %2660 }
0x171c   :  { %v1805_v60 = vmul.f32 %v2661_v59, %v1789_v47  ;;  %v2609_v59 = vld [vmem:[%s3694_s16 + $0x8] sm:$0xff]  }
0x171d   :  { %v2663_v62 = vpop.eup %2662 }
0x171e   :  { %v1813_v61 = vmul.f32 %v2268_v58, %v1805_v60  ;;  %v1806_v63 = vmul.f32 %v2663_v62, %v1790_v49 }
0x1720   :  { %v1814_v0 = vmul.f32 %v2268_v58, %v1806_v63  ;;  %v1821_v1 = vadd.f32 %v2269_v36, %v1813_v61 }
0x1722   :  { %v1822_v2 = vadd.f32 %v2269_v36, %v1814_v0 }
0x1724   :  { %v1828_v31 = vpack.c.bf16 %v1822_v2, %v1821_v1 }
0x1726   :  { %2521 = vmatmul.mubr.msk.bf16.vlgmr.msra.gmra.mrb[40].mxu1 %vm239_vm0, %v1828_v31 }
0x1727   :  { %2540 = vmatprep.mubr.msk.bf16.mxu1 %vm3016_vm1, %v3015_v15  ;;  %2537 = vmatpush3.bf16.msra.mxu1 %v2608_v57 }
0x1728   :  { %2538 = vmatprep.subr.bf16.mxu1 %v3015_v15 }
0x172b   :  { %2539 = vmatpush3.bf16.msra.mxu1 %v2609_v59 }
0x172c   :  { %2544 = vmatprep.subr.bf16.mxu1 %v3015_v15 }
0x17f9   :  { %v1886_v40 = vpop.f32.mrb[40].mxu1 }
0x17fa   :  { %v1887_v7 = vadd.f32 %v2274_v6, %v1886_v40  ;;  %v2522_v8 = vpop.f32.mrb[41].mxu1 }
0x17fb   :  { %v1889_v9 = vpop.f32.mrb[42].mxu1 }
0x17fc   :  { %v1893_v10 = vmul.f32 %v1887_v7, %v1887_v7  ;;  %v1890_v11 = vadd.f32 %v2274_v6, %v1889_v9  ;;  %v2523_v12 = vpop.f32.mrb[43].mxu1 }
0x17fe   :  { %v1895_v13 = vmul.f32 %v1893_v10, %v1887_v7  ;;  %v1894_v42 = vmul.f32 %v1890_v11, %v1890_v11 }
0x1800   :  { %v1897_v14 = vmul.f32 0.044715, %v1895_v13  ;;  %v1896_v16 = vmul.f32 %v1894_v42, %v1890_v11  ;;  %v2610_v42 = vld [vmem:[%s3696_s18] sm:$0xff]  }
0x1802   :  { %v1899_v17 = vadd.f32 %v1897_v14, %v1887_v7  ;;  %v1898_v18 = vmul.f32 0.044715, %v1896_v16  ;;  %v2611_v14 = vld [vmem:[%s3696_s18 + $0x8] sm:$0xff]   ;;  %v2294_v16 = vld [vmem:[#allocation22] ss:$0 sm:$0xff]  ;;  %s2960_s18 = scalar_lea.vmem %s2197_s27, 32 }
0x1803   :  { %p2961_p6 = scmp.ne.s32.totalorder %s2197_s27, %s2960_s18  ;;  %p2966_p8 = scmp.lt.s32.totalorder %s2960_s18, %s2960_s18 }
0x1804   :  { %v1901_v19 = vmul.f32 0.7978846, %v1899_v17  ;;  %v1900_v20 = vadd.f32 %v1898_v18, %v1890_v11 }
0x1805   :  { %p2967_p9 = por %p2966_p8, %p2965_p7 }
0x1806   :  { %2664 = vtanh.f32 %v1901_v19  ;;  %v1902_v21 = vmul.f32 0.7978846, %v1900_v20 }
0x1807   :  { %p2968_p10 = pnand %p2967_p9, %p2961_p6 }
0x1808   :  { %2666 = vtanh.f32 %v1902_v21 }
0x1810   :  { %v2665_v22 = vpop.eup %2664 }
0x1811   :  { %v1905_v23 = vadd.f32 1.0, %v2665_v22 }
0x1812   :  { %v2667_v24 = vpop.eup %2666 }
0x1813   :  { %v1907_v25 = vmul.f32 0.5, %v1905_v23  ;;  %v1906_v29 = vadd.f32 1.0, %v2667_v24 }
0x1815   :  { %v1908_v30 = vmul.f32 0.5, %v1906_v29  ;;  %v1909_v33 = vmul.f32 %v1907_v25, %v1887_v7 }
0x1817   :  { %v1910_v34 = vmul.f32 %v1908_v30, %v1890_v11 }
0x1819   :  { %v1920_v35 = vpack.c.bf16 %v1910_v34, %v1909_v33 }
0x181b   :  { %2533 = vmatmul.mubr.msk.bf16.vlgmr.msra.gmra.mrb[48].mxu0 %vm1086_vm5, %v1920_v35 }
0x18ee   :  { %v1990_v28 = vpop.f32.mrb[48].mxu0 }
0x18ef   :  { %v1991_v38 = vadd.f32 %v2286_v37, %v1990_v28  ;;  %v2534_v39 = vpop.f32.mrb[49].mxu0 }
0x18f0   :  { %v1993_v41 = vpop.f32.mrb[50].mxu0 }
0x18f1   :  { %v1994_v44 = vadd.f32 %v2286_v37, %v1993_v41  ;;  %v2535_v45 = vpop.f32.mrb[51].mxu0  ;;  %v1997_v47 = vadd.f32 %v1991_v38, %v1821_v1  ;;  %v2292_v1 = vld [vmem:[#allocation19 + $0x1] ss:$0 sm:$0xff] }
0x18f3   :  { %v2003_v48 = vsel %vm239_vm0, %v1997_v47, 0.0  ;;  %v1998_v49 = vadd.f32 %v1994_v44, %v1822_v2 }
0x18f4   :  { %2004 = vadd.xlane.f32.xlu1 %v2003_v48 }
0x18f5   :  { %v2006_v50 = vsel %vm239_vm0, %v1998_v49, 0.0 }
0x18f6   :  { %2007 = vadd.xlane.f32.xlu0 %v2006_v50 }
0x1981   :  { %v2005_v51 = vpop.xlane.xlu1 %2004 }
0x1982   :  { %v2009_v52 = vmul.f32 0.03125, %v2005_v51 }
0x1983   :  { %v2008_v26 = vpop.xlane.xlu0 %2007 }
0x1984   :  { %v2011_v27 = vsub.f32 %v1997_v47, %v2009_v52  ;;  %v2010_v53 = vmul.f32 0.03125, %v2008_v26 }
0x1986   :  { %v2012_v54 = vsub.f32 %v1998_v49, %v2010_v53  ;;  %v2013_v46 = vmul.f32 %v2011_v27, %v2011_v27 }
0x1988   :  { %v2015_v55 = vsel %vm239_vm0, %v2013_v46, 0.0  ;;  %v2014_v43 = vmul.f32 %v2012_v54, %v2012_v54 }
0x1989   :  { %2016 = vadd.xlane.f32.xlu1 %v2015_v55 }
0x198a   :  { %v2018_v56 = vsel %vm239_vm0, %v2014_v43, 0.0 }
0x198b   :  { %2019 = vadd.xlane.f32.xlu0 %v2018_v56 }
0x1a16   :  { %v2017_v58 = vpop.xlane.xlu1 %2016 }
0x1a17   :  { %v2021_v60 = vmul.f32 0.03125, %v2017_v58 }
0x1a18   :  { %v2020_v62 = vpop.xlane.xlu0 %2019 }
0x1a19   :  { %v2023_v61 = vadd.f32 1e-12, %v2021_v60  ;;  %v2022_v63 = vmul.f32 0.03125, %v2020_v62 }
0x1a1b   :  { %2668 = vrsqrt.f32 %v2023_v61  ;;  %v2024_v36 = vadd.f32 1e-12, %v2022_v63 }
0x1a1d   :  { %2670 = vrsqrt.f32 %v2024_v36 }
0x1a25   :  { %v2669_v0 = vpop.eup %2668 }
0x1a26   :  { %v2027_v2 = vmul.f32 %v2669_v0, %v2011_v27 }
0x1a27   :  { %v2671_v31 = vpop.eup %2670 }
0x1a28   :  { %v2035_v3 = vmul.f32 %v2292_v1, %v2027_v2  ;;  %v2028_v4 = vmul.f32 %v2671_v31, %v2012_v54 }
0x1a2a   :  { %v2043_v5 = vadd.f32 %v2293_v32, %v2035_v3  ;;  %v2036_v6 = vmul.f32 %v2292_v1, %v2028_v4 }
0x1a2c   :  { %v2044_v40 = vadd.f32 %v2293_v32, %v2036_v6  ;;  %v2049_v7 = vpack.c.bf16 %v2043_v5, %v2043_v5 }
0x1a2e   :  { %v2050_v8 = vpack.c.bf16 %v2044_v40, %v2044_v40  ;;  %v2060_v10 = vunpack.c.l.b16 %v2049_v7 }
0x1a30   :  { %v2061_v9 = vunpack.c.l.b16 %v2050_v8 }
0x1a32   :  { %v2062_v11 = vrot.slane %v2061_v9, 7 }
0x1a34   :  { %v2064_v12 = vsel %vm2063_vm6, %v2062_v11, %v2060_v10 }
0x1a35   :  { %v2065_v13 = vpack.c.b16 %v2064_v12, %v2064_v12 }
0x1a37   :  { %2541 = vmatmul.mubr.msk.bf16.vlgmr.msra.gmra.mrb[44].mxu1 %vm239_vm0, %v2065_v13 }
0x1a38   :  { %2548 = vmatprep.mubr.msk.bf16.mxu1 %vm3016_vm1, %v3015_v15  ;;  %2545 = vmatpush3.bf16.msra.mxu1 %v2610_v42 }
0x1a39   :  { %2546 = vmatprep.subr.bf16.mxu1 %v3015_v15  ;;  %v2298_v15 = vld [vmem:[%s3697_s19] ss:$0 sm:$0xff] }
0x1a3c   :  { %2547 = vmatpush3.bf16.msra.mxu1 %v2611_v14 }
0x1b0a   :  { %v2115_v17 = vpop.f32.mrb[44].mxu1 }
0x1b0b   :  { %v2116_v18 = vadd.f32 %v2294_v16, %v2115_v17  ;;  %v2542_v19 = vpop.f32.mrb[45].mxu1 }
0x1b0c   :  { %v2118_v20 = vpop.f32.mrb[46].mxu1 }
0x1b0d   :  { %2672 = vtanh.f32 %v2116_v18  ;;  %v2543_v21 = vpop.f32.mrb[47].mxu1 }
0x1b17   :  { %v2673_v22 = vpop.eup %2672 }
0x1b18   :  { %v2126_v23 = vpack.c.bf16 %v2673_v22, %v2673_v22 }
0x1b1a   :  { %2549 = vmatmul.mubr.msk.bf16.vlgmr.msra.gmra.mrb[48].mxu1 %vm239_vm0, %v2126_v23 }
0x1bed   :  { %v2183_v24 = vpop.f32.mrb[48].mxu1 }
0x1bee   :  { %v2184_v25 = vadd.f32 %v2298_v15, %v2183_v24  ;;  %v2550_v29 = vpop.f32.mrb[49].mxu1 }
0x1bef   :  { %v2186_v30 = vpop.f32.mrb[50].mxu1 }
0x1bf0   :  { %2189 = vst [vmem:[#allocation23] sm:$0x3] %v2184_v25  ;;  %v2551_v33 = vpop.f32.mrb[51].mxu1 }
0x1bf1   :  { %2971 = shalt.err (!%p2968_p10)
}
0x1bf2   :  { %s2972_s19 = scalar_lea.hbm %s3698_s20, 32 }
0x1bf3   :  { %p2973_p11 = scmp.ne.s32.totalorder %s3698_s20, %s2972_s19  ;;  %p2976_p12 = scmp.lt.u32.totalorder %s2972_s19, %s3698_s20 }
0x1bf5   :  { %p2978_p13 = pnand %p2976_p12, %p2973_p11 }
0x1bf7   :  { %2981 = shalt.err (!%p2978_p13)
}
0x1bf8   :  { %2199 = dma.vmem_to_hbm [thread:$0]  %s2197_s27, 32, %s3698_s20, [#allocation4]  }
0x1bf9   :  { %2996 = dma.done.wait [#allocation4], 32  }
0x1bfa   :  { %2997 = vsyncadd [#allocation4], 4294967264 }
0x1bfb   :  { %2203 = vsyncpa [#allocation3], 1 }
0x1bfc   :  { %2204 = vsyncpa [#allocation6], 1 }
0x1bfd   :  { %2205 = vsyncpa [#allocation9], 1 }
0x1bfe   :  { %2206 = vsyncpa [#allocation12], 1 }
0x1bff   :  { %2207 = vsyncpa [#allocation15], 1 }
0x1c00   :  { %2208 = vsyncpa [#allocation18], 1 }
0x1c01   :  { %2209 = vsyncpa [#allocation21], 1 }
0x1c02   :  { %2210 = vsyncpa [#allocation4], 1 }

</bundles_post_ra>
